<compile_context>
chip_gen: v7x
topology: tpu7x:2x2x1
jax: 0.10.0
libtpu: 0.0.40
codegen_flags: <defaults>
</compile_context>

<pallas_src>
import functools
import math

import jax
import jax.numpy as jnp
from jax.experimental import pallas as pl
from jax.experimental.pallas import tpu as pltpu


# ----------------------------------------------------------------------------
# model config
# ----------------------------------------------------------------------------
VOCAB = 128
MAX_POS = 16
TYPE_VOCAB = 2
HIDDEN = 32
N_HEADS = 2
HEAD_DIM = HIDDEN // N_HEADS
N_LAYERS = 2
INTERMEDIATE = 64
I_PAD = 128            # lane-dense padded FFN intermediate (zero-padded)
QKV_PAD = 128          # lane-dense padded fused-QKV width (3*HIDDEN=96 -> 128)
FC1_OUT = 256          # module hardcodes nn.Linear(hidden_size, 256)
NUM_CLASSES = 3
FC2_PAD = 128          # lane-dense padded logits width (sliced to NUM_CLASSES)
LN_EPS = 1e-12         # matches HF BERT (below f32 resolution; kept for parity)


# ----------------------------------------------------------------------------
# small math helpers (all lower to VPU/EUP ops)
# ----------------------------------------------------------------------------
def _layernorm(x, g, b, eps):
    mu = jnp.mean(x, axis=-1, keepdims=True)
    var = jnp.mean(jnp.square(x - mu), axis=-1, keepdims=True)
    return (x - mu) * jax.lax.rsqrt(var + eps) * g + b


def _erf(x):
    # Abramowitz & Stegun 7.1.26, |error| <= 1.5e-7.  Uses only abs/where/
    # mul/add/div/exp so it lowers cleanly in Mosaic (exp goes to the EUP).
    p = 0.3275911
    a1, a2, a3, a4, a5 = (0.254829592, -0.284496736, 1.421413741,
                          -1.453152027, 1.061405429)
    sgn = jnp.where(x >= 0, 1.0, -1.0)
    ax = jnp.abs(x)
    t = 1.0 / (1.0 + p * ax)
    poly = ((((a5 * t + a4) * t + a3) * t + a2) * t + a1) * t
    return sgn * (1.0 - poly * jnp.exp(-ax * ax))


def _gelu_erf(x):
    # exact (erf) GELU, matching torch.nn.GELU / HF BERT "gelu"
    return 0.5 * x * (1.0 + _erf(x * 0.7071067811865476))


# ----------------------------------------------------------------------------
# fully fused forward kernel: embeddings -> 2 encoder layers -> pooler -> head
# ----------------------------------------------------------------------------
def _fused_forward_kernel(ids_ref, mask_ref,
                          wemb_ref, pemb_ref, temb_ref, eg_ref, eb_ref,
                          wqkv_ref, bqkv_ref, wo_ref, bo_ref,
                          ln1g_ref, ln1b_ref, w1_ref, b1_ref, w2_ref, b2_ref,
                          ln2g_ref, ln2b_ref,
                          pw_ref, pb_ref, fc1w_ref, fc1b_ref, fc2w_ref, fc2b_ref,
                          out_ref,
                          *, batch, seq, n_heads, head_dim, n_layers, eps, scale):
    hidden = n_heads * head_dim
    m = batch * seq

    # ---- embeddings: one-hot MXU gather of word rows + pos + type, then LN ----
    ids = ids_ref[...]                                                   # [M,1] i32
    onehot = (ids == jax.lax.broadcasted_iota(jnp.int32, (m, VOCAB), 1))
    word = jnp.dot(onehot.astype(jnp.float32), wemb_ref[...],
                   preferred_element_type=jnp.float32)                   # [M,H]
    emb = (word.reshape(batch, seq, hidden)
           + pemb_ref[0:seq, :][None, :, :]        # position ids = arange(S)
           + temb_ref[0:1, :][None, :, :])         # token_type ids = 0
    # nn.Dropout after embedding LN -> identity at inference
    x = _layernorm(emb.reshape(m, hidden), eg_ref[...], eb_ref[...], eps)

    # ---- additive attention mask: broadcast ONCE, tiled over heads ----
    mask_add = (1.0 - mask_ref[...].astype(jnp.float32)) * -1e9          # [B,S]
    mask_b = jnp.broadcast_to(mask_add[:, None, :], (batch, seq, seq))   # [B,S,S]
    mask_all = jnp.concatenate([mask_b] * n_heads, axis=0)               # [nh*B,S,S]

    # ---- encoder layers (weights fully resident, loop unrolled) ----
    for l in range(n_layers):
        # fused QKV projection (lane-dense padded to QKV_PAD columns)
        qkv = jnp.dot(x, wqkv_ref[l], preferred_element_type=jnp.float32)
        qkv = qkv + bqkv_ref[l]                                          # [M,128]

        # stack heads into the leading batch axis -> ONE batched attention
        qs, ks, vs = [], [], []
        for h in range(n_heads):
            lo, hi = h * head_dim, (h + 1) * head_dim
            qs.append(qkv[:, lo:hi].reshape(batch, seq, head_dim))
            ks.append(qkv[:, hidden + lo:hidden + hi].reshape(batch, seq, head_dim))
            vs.append(qkv[:, 2 * hidden + lo:2 * hidden + hi].reshape(batch, seq, head_dim))
        q = jnp.concatenate(qs, axis=0)                                  # [nh*B,S,d]
        k = jnp.concatenate(ks, axis=0)
        v = jnp.concatenate(vs, axis=0)

        s = jnp.einsum("nqd,nkd->nqk", q, k,
                       preferred_element_type=jnp.float32) * scale + mask_all
        s = s - jnp.max(s, axis=-1, keepdims=True)
        p = jnp.exp(s)
        p = p / jnp.sum(p, axis=-1, keepdims=True)                       # exact softmax
        ctx = jnp.einsum("nqk,nkd->nqd", p, v,
                         preferred_element_type=jnp.float32)             # [nh*B,S,d]

        # merge heads back to [M, H] (concat along lanes) -> ONE output proj
        ctx = jnp.concatenate(
            [ctx[h * batch:(h + 1) * batch].reshape(m, head_dim)
             for h in range(n_heads)], axis=-1)                          # [M,H]
        attn = jnp.dot(ctx, wo_ref[l], preferred_element_type=jnp.float32)
        attn = attn + bo_ref[l]

        h1 = _layernorm(attn + x, ln1g_ref[l], ln1b_ref[l], eps)

        # FFN (intermediate zero-padded to I_PAD lanes; padding contributes 0)
        f = jnp.dot(h1, w1_ref[l], preferred_element_type=jnp.float32) + b1_ref[l]
        f = _gelu_erf(f)
        f = jnp.dot(f, w2_ref[l], preferred_element_type=jnp.float32) + b2_ref[l]
        x = _layernorm(f + h1, ln2g_ref[l], ln2b_ref[l], eps)

    # ---- CLS rows (s == 0 for every batch element) ----
    cls = jnp.concatenate([x[b * seq:b * seq + 1, :] for b in range(batch)],
                          axis=0)                                        # [B,H]

    # ---- pooler (dense + tanh) -> dropout(identity) -> fc1 -> dropout -> fc2 ----
    pooled = jnp.tanh(jnp.dot(cls, pw_ref[...],
                              preferred_element_type=jnp.float32) + pb_ref[...])
    hid1 = jnp.dot(pooled, fc1w_ref[...],
                   preferred_element_type=jnp.float32) + fc1b_ref[...]   # [B,256]
    logits = jnp.dot(hid1, fc2w_ref[...],
                     preferred_element_type=jnp.float32) + fc2b_ref[...] # [B,128]
    out_ref[...] = logits.astype(out_ref.dtype)


# ----------------------------------------------------------------------------
# wrapper: builds full-array BlockSpecs and launches the single fused kernel
# ----------------------------------------------------------------------------
def bert_sentiment_forward(params, input_ids, attention_mask):
    B, S = input_ids.shape
    assert S <= MAX_POS

    kernel = functools.partial(
        _fused_forward_kernel, batch=B, seq=S, n_heads=N_HEADS,
        head_dim=HEAD_DIM, n_layers=N_LAYERS, eps=LN_EPS,
        scale=1.0 / math.sqrt(HEAD_DIM))

    ids = input_ids.reshape(B * S, 1).astype(jnp.int32)
    mask = attention_mask.astype(jnp.int32)

    operands = (
        ids, mask,
        params["word_emb"], params["pos_emb"], params["type_emb"],
        params["emb_ln_g"], params["emb_ln_b"],
        params["wqkv"], params["bqkv"], params["wo"], params["bo"],
        params["ln1_g"], params["ln1_b"],
        params["w_ffn1"], params["b_ffn1"], params["w_ffn2"], params["b_ffn2"],
        params["ln2_g"], params["ln2_b"],
        params["pooler_w"], params["pooler_b"],
        params["fc1_w"], params["fc1_b"], params["fc2_w"], params["fc2_b"],
    )
    in_specs = [pl.BlockSpec(op.shape, lambda *_, nd=op.ndim: (0,) * nd)
                for op in operands]
    out_spec = pl.BlockSpec((B, FC2_PAD), lambda *_: (0, 0))

    logits_padded = pl.pallas_call(
        kernel,
        out_shape=jax.ShapeDtypeStruct((B, FC2_PAD), jnp.float32),
        in_specs=in_specs,
        out_specs=out_spec,
        compiler_params=pltpu.CompilerParams(vmem_limit_bytes=32 * 1024 * 1024),
    )(*operands)
    return logits_padded[:, :NUM_CLASSES]


# ----------------------------------------------------------------------------
# deterministic parameter init (per-layer weights stacked on a [L, ...] axis,
# narrow dims zero-padded to 128 lanes so every matmul/store is lane-dense)
# ----------------------------------------------------------------------------
def init_params(key):
    ks = jax.random.split(key, 10)

    def nrm(k, shape):
        return 0.02 * jax.random.normal(k, shape, jnp.float32)

    wqkv = jnp.pad(nrm(ks[3], (N_LAYERS, HIDDEN, 3 * HIDDEN)),
                   ((0, 0), (0, 0), (0, QKV_PAD - 3 * HIDDEN)))
    w_ffn1 = jnp.pad(nrm(ks[5], (N_LAYERS, HIDDEN, INTERMEDIATE)),
                     ((0, 0), (0, 0), (0, I_PAD - INTERMEDIATE)))
    w_ffn2 = jnp.pad(nrm(ks[6], (N_LAYERS, INTERMEDIATE, HIDDEN)),
                     ((0, 0), (0, I_PAD - INTERMEDIATE), (0, 0)))
    fc2_w = jnp.pad(nrm(ks[9], (FC1_OUT, NUM_CLASSES)),
                    ((0, 0), (0, FC2_PAD - NUM_CLASSES)))

    # TODO(synk): at real BERT sizes store the stacked [L,...] weights in bf16
    # and stream them with a per-layer grid + pl.Buffered(2) weight specs.
    return {
        "word_emb": nrm(ks[0], (VOCAB, HIDDEN)),
        "pos_emb": nrm(ks[1], (MAX_POS, HIDDEN)),
        "type_emb": nrm(ks[2], (TYPE_VOCAB, HIDDEN)),
        "emb_ln_g": jnp.ones((1, HIDDEN), jnp.float32),
        "emb_ln_b": jnp.zeros((1, HIDDEN), jnp.float32),
        "wqkv": wqkv,
        "bqkv": jnp.zeros((N_LAYERS, 1, QKV_PAD), jnp.float32),
        "wo": nrm(ks[4], (N_LAYERS, HIDDEN, HIDDEN)),
        "bo": jnp.zeros((N_LAYERS, 1, HIDDEN), jnp.float32),
        "ln1_g": jnp.ones((N_LAYERS, 1, HIDDEN), jnp.float32),
        "ln1_b": jnp.zeros((N_LAYERS, 1, HIDDEN), jnp.float32),
        "w_ffn1": w_ffn1,
        "b_ffn1": jnp.zeros((N_LAYERS, 1, I_PAD), jnp.float32),
        "w_ffn2": w_ffn2,
        "b_ffn2": jnp.zeros((N_LAYERS, 1, HIDDEN), jnp.float32),
        "ln2_g": jnp.ones((N_LAYERS, 1, HIDDEN), jnp.float32),
        "ln2_b": jnp.zeros((N_LAYERS, 1, HIDDEN), jnp.float32),
        "pooler_w": nrm(ks[7], (HIDDEN, HIDDEN)),
        "pooler_b": jnp.zeros((1, HIDDEN), jnp.float32),
        "fc1_w": nrm(ks[8], (HIDDEN, FC1_OUT)),
        "fc1_b": jnp.zeros((1, FC1_OUT), jnp.float32),
        "fc2_w": fc2_w,
        "fc2_b": jnp.zeros((1, FC2_PAD), jnp.float32),
    }


# ----------------------------------------------------------------------------
if __name__ == "__main__":
    key = jax.random.PRNGKey(0)
    k_param, k_ids = jax.random.split(key)

    params = init_params(k_param)

    B, S = 2, 8
    input_ids = jax.random.randint(k_ids, (B, S), 0, VOCAB, dtype=jnp.int32)
    attention_mask = jnp.array(
        [[1, 1, 1, 1, 1, 1, 1, 1],
         [1, 1, 1, 1, 1, 1, 0, 0]], dtype=jnp.int32)

    logits = bert_sentiment_forward(params, input_ids, attention_mask)
    jax.block_until_ready(logits)

    assert logits.shape == (B, NUM_CLASSES)
    assert bool(jnp.all(jnp.isfinite(logits)))
    print("KERNEL_OK")
</pallas_src>

<mosaic_0001>
module attributes {stable_mosaic.version = 11 : i64} {
  func.func @_fused_forward_kernel(%arg0: memref<16x1xi32, #tpu.memory_space<vmem>>, %arg1: memref<2x8xi32, #tpu.memory_space<vmem>>, %arg2: memref<128x32xf32, #tpu.memory_space<vmem>>, %arg3: memref<16x32xf32, #tpu.memory_space<vmem>>, %arg4: memref<2x32xf32, #tpu.memory_space<vmem>>, %arg5: memref<1x32xf32, #tpu.memory_space<vmem>>, %arg6: memref<1x32xf32, #tpu.memory_space<vmem>>, %arg7: memref<2x32x128xf32, #tpu.memory_space<vmem>>, %arg8: memref<2x1x128xf32, #tpu.memory_space<vmem>>, %arg9: memref<2x32x32xf32, #tpu.memory_space<vmem>>, %arg10: memref<2x1x32xf32, #tpu.memory_space<vmem>>, %arg11: memref<2x1x32xf32, #tpu.memory_space<vmem>>, %arg12: memref<2x1x32xf32, #tpu.memory_space<vmem>>, %arg13: memref<2x32x128xf32, #tpu.memory_space<vmem>>, %arg14: memref<2x1x128xf32, #tpu.memory_space<vmem>>, %arg15: memref<2x128x32xf32, #tpu.memory_space<vmem>>, %arg16: memref<2x1x32xf32, #tpu.memory_space<vmem>>, %arg17: memref<2x1x32xf32, #tpu.memory_space<vmem>>, %arg18: memref<2x1x32xf32, #tpu.memory_space<vmem>>, %arg19: memref<32x32xf32, #tpu.memory_space<vmem>>, %arg20: memref<1x32xf32, #tpu.memory_space<vmem>>, %arg21: memref<32x256xf32, #tpu.memory_space<vmem>>, %arg22: memref<1x256xf32, #tpu.memory_space<vmem>>, %arg23: memref<256x128xf32, #tpu.memory_space<vmem>>, %arg24: memref<1x128xf32, #tpu.memory_space<vmem>>, %arg25: memref<2x128xf32, #tpu.memory_space<vmem>>) attributes {dimension_semantics = [], scalar_prefetch = 0 : i64, scratch_operands = 0 : i64, tpu.core_type = #tpu.core_type<tc>} {
    %c0 = arith.constant 0 : index
    %c0_0 = arith.constant 0 : index
    %0 = vector.load %arg0[%c0, %c0_0] : memref<16x1xi32, #tpu.memory_space<vmem>>, vector<16x1xi32>
    %1 = tpu.iota {dimensions = array<i32: 1>} : vector<16x128xi32>
    %2 = vector.broadcast %0 : vector<16x1xi32> to vector<16x128xi32>
    %3 = arith.cmpi eq, %2, %1 : vector<16x128xi32>
    %4 = arith.extui %3 : vector<16x128xi1> to vector<16x128xi32>
    %5 = arith.sitofp %4 : vector<16x128xi32> to vector<16x128xf32>
    %c0_1 = arith.constant 0 : index
    %c0_2 = arith.constant 0 : index
    %6 = vector.load %arg2[%c0_1, %c0_2] : memref<128x32xf32, #tpu.memory_space<vmem>>, vector<128x32xf32>
    %cst = arith.constant dense<0.000000e+00> : vector<16x32xf32>
    %7 = tpu.matmul %5, %6, %cst {dimension_numbers = #tpu.dot_dimension_numbers<[1], [0], [0], [1], [0, 0, 1, 1], [], []>} : vector<16x128xf32>, vector<128x32xf32>, vector<16x32xf32> -> vector<16x32xf32>
    %8 = vector.shape_cast %7 : vector<16x32xf32> to vector<2x8x32xf32>
    %c0_3 = arith.constant 0 : index
    %c0_4 = arith.constant 0 : index
    %9 = vector.load %arg3[%c0_3, %c0_4] : memref<16x32xf32, #tpu.memory_space<vmem>>, vector<8x32xf32>
    %10 = vector.shape_cast %9 : vector<8x32xf32> to vector<1x8x32xf32>
    %11 = vector.broadcast %10 : vector<1x8x32xf32> to vector<2x8x32xf32>
    %12 = arith.addf %8, %11 : vector<2x8x32xf32>
    %c0_5 = arith.constant 0 : index
    %c0_6 = arith.constant 0 : index
    %13 = vector.load %arg4[%c0_5, %c0_6] : memref<2x32xf32, #tpu.memory_space<vmem>>, vector<1x32xf32>
    %14 = vector.shape_cast %13 : vector<1x32xf32> to vector<1x1x32xf32>
    %15 = vector.broadcast %14 : vector<1x1x32xf32> to vector<2x8x32xf32>
    %16 = arith.addf %12, %15 : vector<2x8x32xf32>
    %17 = vector.shape_cast %16 : vector<2x8x32xf32> to vector<16x32xf32>
    %c0_7 = arith.constant 0 : index
    %c0_8 = arith.constant 0 : index
    %18 = vector.load %arg5[%c0_7, %c0_8] : memref<1x32xf32, #tpu.memory_space<vmem>>, vector<1x32xf32>
    %c0_9 = arith.constant 0 : index
    %c0_10 = arith.constant 0 : index
    %19 = vector.load %arg6[%c0_9, %c0_10] : memref<1x32xf32, #tpu.memory_space<vmem>>, vector<1x32xf32>
    %cst_11 = arith.constant dense<0.000000e+00> : vector<16xf32>
    %20 = vector.multi_reduction <add>, %17, %cst_11 [1] : vector<16x32xf32> to vector<16xf32>
    %21 = vector.shape_cast %20 : vector<16xf32> to vector<16x1xf32>
    %cst_12 = arith.constant 3.200000e+01 : f32
    %22 = vector.broadcast %cst_12 : f32 to vector<16x1xf32>
    %23 = arith.divf %21, %22 : vector<16x1xf32>
    %24 = vector.broadcast %23 : vector<16x1xf32> to vector<16x32xf32>
    %25 = arith.subf %17, %24 : vector<16x32xf32>
    %26 = arith.mulf %25, %25 : vector<16x32xf32>
    %cst_13 = arith.constant dense<0.000000e+00> : vector<16xf32>
    %27 = vector.multi_reduction <add>, %26, %cst_13 [1] : vector<16x32xf32> to vector<16xf32>
    %28 = vector.shape_cast %27 : vector<16xf32> to vector<16x1xf32>
    %cst_14 = arith.constant 3.200000e+01 : f32
    %29 = vector.broadcast %cst_14 : f32 to vector<16x1xf32>
    %30 = arith.divf %28, %29 : vector<16x1xf32>
    %31 = vector.broadcast %23 : vector<16x1xf32> to vector<16x32xf32>
    %32 = arith.subf %17, %31 : vector<16x32xf32>
    %cst_15 = arith.constant 9.99999996E-13 : f32
    %33 = vector.broadcast %cst_15 : f32 to vector<16x1xf32>
    %34 = arith.addf %30, %33 : vector<16x1xf32>
    %35 = math.rsqrt %34 : vector<16x1xf32>
    %36 = vector.broadcast %35 : vector<16x1xf32> to vector<16x32xf32>
    %37 = arith.mulf %32, %36 : vector<16x32xf32>
    %38 = vector.broadcast %18 : vector<1x32xf32> to vector<16x32xf32>
    %39 = arith.mulf %37, %38 : vector<16x32xf32>
    %40 = vector.broadcast %19 : vector<1x32xf32> to vector<16x32xf32>
    %41 = arith.addf %39, %40 : vector<16x32xf32>
    %c0_16 = arith.constant 0 : index
    %c0_17 = arith.constant 0 : index
    %42 = vector.load %arg1[%c0_16, %c0_17] : memref<2x8xi32, #tpu.memory_space<vmem>>, vector<2x8xi32>
    %43 = arith.sitofp %42 : vector<2x8xi32> to vector<2x8xf32>
    %cst_18 = arith.constant 1.000000e+00 : f32
    %44 = vector.broadcast %cst_18 : f32 to vector<2x8xf32>
    %45 = arith.subf %44, %43 : vector<2x8xf32>
    %cst_19 = arith.constant -1.000000e+09 : f32
    %46 = vector.broadcast %cst_19 : f32 to vector<2x8xf32>
    %47 = arith.mulf %45, %46 : vector<2x8xf32>
    %48 = vector.shape_cast %47 : vector<2x8xf32> to vector<2x1x8xf32>
    %49 = vector.shape_cast %48 : vector<2x1x8xf32> to vector<2x1x8xf32>
    %50 = vector.broadcast %49 : vector<2x1x8xf32> to vector<2x8x8xf32>
    %51 = tpu.concatenate %50, %50 in 0 : vector<2x8x8xf32>, vector<2x8x8xf32> -> vector<4x8x8xf32>
    %c0_20 = arith.constant 0 : index
    %c0_21 = arith.constant 0 : index
    %c0_22 = arith.constant 0 : index
    %52 = vector.load %arg7[%c0_20, %c0_21, %c0_22] : memref<2x32x128xf32, #tpu.memory_space<vmem>>, vector<1x32x128xf32>
    %53 = vector.shape_cast %52 : vector<1x32x128xf32> to vector<32x128xf32>
    %cst_23 = arith.constant dense<0.000000e+00> : vector<16x128xf32>
    %54 = tpu.matmul %41, %53, %cst_23 {dimension_numbers = #tpu.dot_dimension_numbers<[1], [0], [0], [1], [0, 0, 1, 1], [], []>} : vector<16x32xf32>, vector<32x128xf32>, vector<16x128xf32> -> vector<16x128xf32>
    %c0_24 = arith.constant 0 : index
    %c0_25 = arith.constant 0 : index
    %c0_26 = arith.constant 0 : index
    %55 = vector.load %arg8[%c0_24, %c0_25, %c0_26] : memref<2x1x128xf32, #tpu.memory_space<vmem>>, vector<1x1x128xf32>
    %56 = vector.shape_cast %55 : vector<1x1x128xf32> to vector<1x128xf32>
    %57 = vector.broadcast %56 : vector<1x128xf32> to vector<16x128xf32>
    %58 = arith.addf %54, %57 : vector<16x128xf32>
    %59 = vector.extract_strided_slice %58 {offsets = [0, 0], sizes = [16, 16], strides = [1, 1]} : vector<16x128xf32> to vector<16x16xf32>
    %60 = vector.shape_cast %59 : vector<16x16xf32> to vector<2x8x16xf32>
    %61 = vector.extract_strided_slice %58 {offsets = [0, 32], sizes = [16, 16], strides = [1, 1]} : vector<16x128xf32> to vector<16x16xf32>
    %62 = vector.shape_cast %61 : vector<16x16xf32> to vector<2x8x16xf32>
    %63 = vector.extract_strided_slice %58 {offsets = [0, 64], sizes = [16, 16], strides = [1, 1]} : vector<16x128xf32> to vector<16x16xf32>
    %64 = vector.shape_cast %63 : vector<16x16xf32> to vector<2x8x16xf32>
    %65 = vector.extract_strided_slice %58 {offsets = [0, 16], sizes = [16, 16], strides = [1, 1]} : vector<16x128xf32> to vector<16x16xf32>
    %66 = vector.shape_cast %65 : vector<16x16xf32> to vector<2x8x16xf32>
    %67 = vector.extract_strided_slice %58 {offsets = [0, 48], sizes = [16, 16], strides = [1, 1]} : vector<16x128xf32> to vector<16x16xf32>
    %68 = vector.shape_cast %67 : vector<16x16xf32> to vector<2x8x16xf32>
    %69 = vector.extract_strided_slice %58 {offsets = [0, 80], sizes = [16, 16], strides = [1, 1]} : vector<16x128xf32> to vector<16x16xf32>
    %70 = vector.shape_cast %69 : vector<16x16xf32> to vector<2x8x16xf32>
    %71 = tpu.concatenate %60, %66 in 0 : vector<2x8x16xf32>, vector<2x8x16xf32> -> vector<4x8x16xf32>
    %72 = tpu.concatenate %62, %68 in 0 : vector<2x8x16xf32>, vector<2x8x16xf32> -> vector<4x8x16xf32>
    %73 = tpu.concatenate %64, %70 in 0 : vector<2x8x16xf32>, vector<2x8x16xf32> -> vector<4x8x16xf32>
    "tpu.trace_start"() <{level = 10 : i32, message = "nqd,nkd->nqk"}> : () -> ()
    %cst_27 = arith.constant dense<0.000000e+00> : vector<4x8x8xf32>
    %74 = tpu.matmul %71, %72, %cst_27 {dimension_numbers = #tpu.dot_dimension_numbers<[2], [2], [1], [1], [0, 0, 0, 1, 1, 1], [0], [0]>} : vector<4x8x16xf32>, vector<4x8x16xf32>, vector<4x8x8xf32> -> vector<4x8x8xf32>
    "tpu.trace_stop"() : () -> ()
    %cst_28 = arith.constant 2.500000e-01 : f32
    %75 = vector.broadcast %cst_28 : f32 to vector<4x8x8xf32>
    %76 = arith.mulf %74, %75 : vector<4x8x8xf32>
    %77 = arith.addf %76, %51 : vector<4x8x8xf32>
    %cst_29 = arith.constant dense<0xFF800000> : vector<4x8xf32>
    %78 = vector.multi_reduction <maximumf>, %77, %cst_29 [2] : vector<4x8x8xf32> to vector<4x8xf32>
    %79 = vector.shape_cast %78 : vector<4x8xf32> to vector<4x8x1xf32>
    %80 = vector.broadcast %79 : vector<4x8x1xf32> to vector<4x8x8xf32>
    %81 = arith.subf %77, %80 : vector<4x8x8xf32>
    %82 = math.exp %81 : vector<4x8x8xf32>
    %cst_30 = arith.constant dense<0.000000e+00> : vector<4x8xf32>
    %83 = vector.multi_reduction <add>, %82, %cst_30 [2] : vector<4x8x8xf32> to vector<4x8xf32>
    %84 = vector.shape_cast %83 : vector<4x8xf32> to vector<4x8x1xf32>
    %85 = vector.broadcast %84 : vector<4x8x1xf32> to vector<4x8x8xf32>
    %86 = arith.divf %82, %85 : vector<4x8x8xf32>
    "tpu.trace_start"() <{level = 10 : i32, message = "nqk,nkd->nqd"}> : () -> ()
    %cst_31 = arith.constant dense<0.000000e+00> : vector<4x8x16xf32>
    %87 = tpu.matmul %86, %73, %cst_31 {dimension_numbers = #tpu.dot_dimension_numbers<[2], [1], [1], [2], [0, 0, 0, 1, 1, 2], [0], [0]>} : vector<4x8x8xf32>, vector<4x8x16xf32>, vector<4x8x16xf32> -> vector<4x8x16xf32>
    "tpu.trace_stop"() : () -> ()
    %88 = vector.extract_strided_slice %87 {offsets = [0, 0, 0], sizes = [2, 8, 16], strides = [1, 1, 1]} : vector<4x8x16xf32> to vector<2x8x16xf32>
    %89 = vector.shape_cast %88 : vector<2x8x16xf32> to vector<16x16xf32>
    %90 = vector.extract_strided_slice %87 {offsets = [2, 0, 0], sizes = [2, 8, 16], strides = [1, 1, 1]} : vector<4x8x16xf32> to vector<2x8x16xf32>
    %91 = vector.shape_cast %90 : vector<2x8x16xf32> to vector<16x16xf32>
    %92 = tpu.concatenate %89, %91 in 1 : vector<16x16xf32>, vector<16x16xf32> -> vector<16x32xf32>
    %c0_32 = arith.constant 0 : index
    %c0_33 = arith.constant 0 : index
    %c0_34 = arith.constant 0 : index
    %93 = vector.load %arg9[%c0_32, %c0_33, %c0_34] : memref<2x32x32xf32, #tpu.memory_space<vmem>>, vector<1x32x32xf32>
    %94 = vector.shape_cast %93 : vector<1x32x32xf32> to vector<32x32xf32>
    %cst_35 = arith.constant dense<0.000000e+00> : vector<16x32xf32>
    %95 = tpu.matmul %92, %94, %cst_35 {dimension_numbers = #tpu.dot_dimension_numbers<[1], [0], [0], [1], [0, 0, 1, 1], [], []>} : vector<16x32xf32>, vector<32x32xf32>, vector<16x32xf32> -> vector<16x32xf32>
    %c0_36 = arith.constant 0 : index
    %c0_37 = arith.constant 0 : index
    %c0_38 = arith.constant 0 : index
    %96 = vector.load %arg10[%c0_36, %c0_37, %c0_38] : memref<2x1x32xf32, #tpu.memory_space<vmem>>, vector<1x1x32xf32>
    %97 = vector.shape_cast %96 : vector<1x1x32xf32> to vector<1x32xf32>
    %98 = vector.broadcast %97 : vector<1x32xf32> to vector<16x32xf32>
    %99 = arith.addf %95, %98 : vector<16x32xf32>
    %100 = arith.addf %99, %41 : vector<16x32xf32>
    %c0_39 = arith.constant 0 : index
    %c0_40 = arith.constant 0 : index
    %c0_41 = arith.constant 0 : index
    %101 = vector.load %arg11[%c0_39, %c0_40, %c0_41] : memref<2x1x32xf32, #tpu.memory_space<vmem>>, vector<1x1x32xf32>
    %102 = vector.shape_cast %101 : vector<1x1x32xf32> to vector<1x32xf32>
    %c0_42 = arith.constant 0 : index
    %c0_43 = arith.constant 0 : index
    %c0_44 = arith.constant 0 : index
    %103 = vector.load %arg12[%c0_42, %c0_43, %c0_44] : memref<2x1x32xf32, #tpu.memory_space<vmem>>, vector<1x1x32xf32>
    %104 = vector.shape_cast %103 : vector<1x1x32xf32> to vector<1x32xf32>
    %cst_45 = arith.constant dense<0.000000e+00> : vector<16xf32>
    %105 = vector.multi_reduction <add>, %100, %cst_45 [1] : vector<16x32xf32> to vector<16xf32>
    %106 = vector.shape_cast %105 : vector<16xf32> to vector<16x1xf32>
    %cst_46 = arith.constant 3.200000e+01 : f32
    %107 = vector.broadcast %cst_46 : f32 to vector<16x1xf32>
    %108 = arith.divf %106, %107 : vector<16x1xf32>
    %109 = vector.broadcast %108 : vector<16x1xf32> to vector<16x32xf32>
    %110 = arith.subf %100, %109 : vector<16x32xf32>
    %111 = arith.mulf %110, %110 : vector<16x32xf32>
    %cst_47 = arith.constant dense<0.000000e+00> : vector<16xf32>
    %112 = vector.multi_reduction <add>, %111, %cst_47 [1] : vector<16x32xf32> to vector<16xf32>
    %113 = vector.shape_cast %112 : vector<16xf32> to vector<16x1xf32>
    %cst_48 = arith.constant 3.200000e+01 : f32
    %114 = vector.broadcast %cst_48 : f32 to vector<16x1xf32>
    %115 = arith.divf %113, %114 : vector<16x1xf32>
    %116 = vector.broadcast %108 : vector<16x1xf32> to vector<16x32xf32>
    %117 = arith.subf %100, %116 : vector<16x32xf32>
    %cst_49 = arith.constant 9.99999996E-13 : f32
    %118 = vector.broadcast %cst_49 : f32 to vector<16x1xf32>
    %119 = arith.addf %115, %118 : vector<16x1xf32>
    %120 = math.rsqrt %119 : vector<16x1xf32>
    %121 = vector.broadcast %120 : vector<16x1xf32> to vector<16x32xf32>
    %122 = arith.mulf %117, %121 : vector<16x32xf32>
    %123 = vector.broadcast %102 : vector<1x32xf32> to vector<16x32xf32>
    %124 = arith.mulf %122, %123 : vector<16x32xf32>
    %125 = vector.broadcast %104 : vector<1x32xf32> to vector<16x32xf32>
    %126 = arith.addf %124, %125 : vector<16x32xf32>
    %c0_50 = arith.constant 0 : index
    %c0_51 = arith.constant 0 : index
    %c0_52 = arith.constant 0 : index
    %127 = vector.load %arg13[%c0_50, %c0_51, %c0_52] : memref<2x32x128xf32, #tpu.memory_space<vmem>>, vector<1x32x128xf32>
    %128 = vector.shape_cast %127 : vector<1x32x128xf32> to vector<32x128xf32>
    %cst_53 = arith.constant dense<0.000000e+00> : vector<16x128xf32>
    %129 = tpu.matmul %126, %128, %cst_53 {dimension_numbers = #tpu.dot_dimension_numbers<[1], [0], [0], [1], [0, 0, 1, 1], [], []>} : vector<16x32xf32>, vector<32x128xf32>, vector<16x128xf32> -> vector<16x128xf32>
    %c0_54 = arith.constant 0 : index
    %c0_55 = arith.constant 0 : index
    %c0_56 = arith.constant 0 : index
    %130 = vector.load %arg14[%c0_54, %c0_55, %c0_56] : memref<2x1x128xf32, #tpu.memory_space<vmem>>, vector<1x1x128xf32>
    %131 = vector.shape_cast %130 : vector<1x1x128xf32> to vector<1x128xf32>
    %132 = vector.broadcast %131 : vector<1x128xf32> to vector<16x128xf32>
    %133 = arith.addf %129, %132 : vector<16x128xf32>
    %cst_57 = arith.constant 5.000000e-01 : f32
    %134 = vector.broadcast %cst_57 : f32 to vector<16x128xf32>
    %135 = arith.mulf %134, %133 : vector<16x128xf32>
    %cst_58 = arith.constant 0.707106769 : f32
    %136 = vector.broadcast %cst_58 : f32 to vector<16x128xf32>
    %137 = arith.mulf %133, %136 : vector<16x128xf32>
    %cst_59 = arith.constant 0.000000e+00 : f32
    %138 = vector.broadcast %cst_59 : f32 to vector<16x128xf32>
    %139 = arith.cmpf oge, %137, %138 : vector<16x128xf32>
    %cst_60 = arith.constant 1.000000e+00 : f32
    %cst_61 = arith.constant -1.000000e+00 : f32
    %140 = vector.broadcast %cst_60 : f32 to vector<16x128xf32>
    %141 = vector.broadcast %cst_61 : f32 to vector<16x128xf32>
    %142 = arith.select %139, %140, %141 : vector<16x128xi1>, vector<16x128xf32>
    %143 = math.absf %137 : vector<16x128xf32>
    %cst_62 = arith.constant 0.327591091 : f32
    %144 = vector.broadcast %cst_62 : f32 to vector<16x128xf32>
    %145 = arith.mulf %144, %143 : vector<16x128xf32>
    %cst_63 = arith.constant 1.000000e+00 : f32
    %146 = vector.broadcast %cst_63 : f32 to vector<16x128xf32>
    %147 = arith.addf %146, %145 : vector<16x128xf32>
    %cst_64 = arith.constant 1.000000e+00 : f32
    %148 = vector.broadcast %cst_64 : f32 to vector<16x128xf32>
    %149 = arith.divf %148, %147 : vector<16x128xf32>
    %cst_65 = arith.constant 1.06140542 : f32
    %150 = vector.broadcast %cst_65 : f32 to vector<16x128xf32>
    %151 = arith.mulf %150, %149 : vector<16x128xf32>
    %cst_66 = arith.constant -1.45315206 : f32
    %152 = vector.broadcast %cst_66 : f32 to vector<16x128xf32>
    %153 = arith.addf %151, %152 : vector<16x128xf32>
    %154 = arith.mulf %153, %149 : vector<16x128xf32>
    %cst_67 = arith.constant 1.42141378 : f32
    %155 = vector.broadcast %cst_67 : f32 to vector<16x128xf32>
    %156 = arith.addf %154, %155 : vector<16x128xf32>
    %157 = arith.mulf %156, %149 : vector<16x128xf32>
    %cst_68 = arith.constant -0.284496725 : f32
    %158 = vector.broadcast %cst_68 : f32 to vector<16x128xf32>
    %159 = arith.addf %157, %158 : vector<16x128xf32>
    %160 = arith.mulf %159, %149 : vector<16x128xf32>
    %cst_69 = arith.constant 0.254829586 : f32
    %161 = vector.broadcast %cst_69 : f32 to vector<16x128xf32>
    %162 = arith.addf %160, %161 : vector<16x128xf32>
    %163 = arith.mulf %162, %149 : vector<16x128xf32>
    %cst_70 = arith.constant 0.000000e+00 : f32
    %164 = vector.broadcast %cst_70 : f32 to vector<16x128xf32>
    %165 = arith.subf %164, %143 : vector<16x128xf32>
    %166 = arith.mulf %165, %143 : vector<16x128xf32>
    %167 = math.exp %166 : vector<16x128xf32>
    %168 = arith.mulf %163, %167 : vector<16x128xf32>
    %cst_71 = arith.constant 1.000000e+00 : f32
    %169 = vector.broadcast %cst_71 : f32 to vector<16x128xf32>
    %170 = arith.subf %169, %168 : vector<16x128xf32>
    %171 = arith.mulf %142, %170 : vector<16x128xf32>
    %cst_72 = arith.constant 1.000000e+00 : f32
    %172 = vector.broadcast %cst_72 : f32 to vector<16x128xf32>
    %173 = arith.addf %172, %171 : vector<16x128xf32>
    %174 = arith.mulf %135, %173 : vector<16x128xf32>
    %c0_73 = arith.constant 0 : index
    %c0_74 = arith.constant 0 : index
    %c0_75 = arith.constant 0 : index
    %175 = vector.load %arg15[%c0_73, %c0_74, %c0_75] : memref<2x128x32xf32, #tpu.memory_space<vmem>>, vector<1x128x32xf32>
    %176 = vector.shape_cast %175 : vector<1x128x32xf32> to vector<128x32xf32>
    %cst_76 = arith.constant dense<0.000000e+00> : vector<16x32xf32>
    %177 = tpu.matmul %174, %176, %cst_76 {dimension_numbers = #tpu.dot_dimension_numbers<[1], [0], [0], [1], [0, 0, 1, 1], [], []>} : vector<16x128xf32>, vector<128x32xf32>, vector<16x32xf32> -> vector<16x32xf32>
    %c0_77 = arith.constant 0 : index
    %c0_78 = arith.constant 0 : index
    %c0_79 = arith.constant 0 : index
    %178 = vector.load %arg16[%c0_77, %c0_78, %c0_79] : memref<2x1x32xf32, #tpu.memory_space<vmem>>, vector<1x1x32xf32>
    %179 = vector.shape_cast %178 : vector<1x1x32xf32> to vector<1x32xf32>
    %180 = vector.broadcast %179 : vector<1x32xf32> to vector<16x32xf32>
    %181 = arith.addf %177, %180 : vector<16x32xf32>
    %182 = arith.addf %181, %126 : vector<16x32xf32>
    %c0_80 = arith.constant 0 : index
    %c0_81 = arith.constant 0 : index
    %c0_82 = arith.constant 0 : index
    %183 = vector.load %arg17[%c0_80, %c0_81, %c0_82] : memref<2x1x32xf32, #tpu.memory_space<vmem>>, vector<1x1x32xf32>
    %184 = vector.shape_cast %183 : vector<1x1x32xf32> to vector<1x32xf32>
    %c0_83 = arith.constant 0 : index
    %c0_84 = arith.constant 0 : index
    %c0_85 = arith.constant 0 : index
    %185 = vector.load %arg18[%c0_83, %c0_84, %c0_85] : memref<2x1x32xf32, #tpu.memory_space<vmem>>, vector<1x1x32xf32>
    %186 = vector.shape_cast %185 : vector<1x1x32xf32> to vector<1x32xf32>
    %cst_86 = arith.constant dense<0.000000e+00> : vector<16xf32>
    %187 = vector.multi_reduction <add>, %182, %cst_86 [1] : vector<16x32xf32> to vector<16xf32>
    %188 = vector.shape_cast %187 : vector<16xf32> to vector<16x1xf32>
    %cst_87 = arith.constant 3.200000e+01 : f32
    %189 = vector.broadcast %cst_87 : f32 to vector<16x1xf32>
    %190 = arith.divf %188, %189 : vector<16x1xf32>
    %191 = vector.broadcast %190 : vector<16x1xf32> to vector<16x32xf32>
    %192 = arith.subf %182, %191 : vector<16x32xf32>
    %193 = arith.mulf %192, %192 : vector<16x32xf32>
    %cst_88 = arith.constant dense<0.000000e+00> : vector<16xf32>
    %194 = vector.multi_reduction <add>, %193, %cst_88 [1] : vector<16x32xf32> to vector<16xf32>
    %195 = vector.shape_cast %194 : vector<16xf32> to vector<16x1xf32>
    %cst_89 = arith.constant 3.200000e+01 : f32
    %196 = vector.broadcast %cst_89 : f32 to vector<16x1xf32>
    %197 = arith.divf %195, %196 : vector<16x1xf32>
    %198 = vector.broadcast %190 : vector<16x1xf32> to vector<16x32xf32>
    %199 = arith.subf %182, %198 : vector<16x32xf32>
    %cst_90 = arith.constant 9.99999996E-13 : f32
    %200 = vector.broadcast %cst_90 : f32 to vector<16x1xf32>
    %201 = arith.addf %197, %200 : vector<16x1xf32>
    %202 = math.rsqrt %201 : vector<16x1xf32>
    %203 = vector.broadcast %202 : vector<16x1xf32> to vector<16x32xf32>
    %204 = arith.mulf %199, %203 : vector<16x32xf32>
    %205 = vector.broadcast %184 : vector<1x32xf32> to vector<16x32xf32>
    %206 = arith.mulf %204, %205 : vector<16x32xf32>
    %207 = vector.broadcast %186 : vector<1x32xf32> to vector<16x32xf32>
    %208 = arith.addf %206, %207 : vector<16x32xf32>
    %c1 = arith.constant 1 : index
    %c0_91 = arith.constant 0 : index
    %c0_92 = arith.constant 0 : index
    %209 = vector.load %arg7[%c1, %c0_91, %c0_92] : memref<2x32x128xf32, #tpu.memory_space<vmem>>, vector<1x32x128xf32>
    %210 = vector.shape_cast %209 : vector<1x32x128xf32> to vector<32x128xf32>
    %cst_93 = arith.constant dense<0.000000e+00> : vector<16x128xf32>
    %211 = tpu.matmul %208, %210, %cst_93 {dimension_numbers = #tpu.dot_dimension_numbers<[1], [0], [0], [1], [0, 0, 1, 1], [], []>} : vector<16x32xf32>, vector<32x128xf32>, vector<16x128xf32> -> vector<16x128xf32>
    %c1_94 = arith.constant 1 : index
    %c0_95 = arith.constant 0 : index
    %c0_96 = arith.constant 0 : index
    %212 = vector.load %arg8[%c1_94, %c0_95, %c0_96] : memref<2x1x128xf32, #tpu.memory_space<vmem>>, vector<1x1x128xf32>
    %213 = vector.shape_cast %212 : vector<1x1x128xf32> to vector<1x128xf32>
    %214 = vector.broadcast %213 : vector<1x128xf32> to vector<16x128xf32>
    %215 = arith.addf %211, %214 : vector<16x128xf32>
    %216 = vector.extract_strided_slice %215 {offsets = [0, 0], sizes = [16, 16], strides = [1, 1]} : vector<16x128xf32> to vector<16x16xf32>
    %217 = vector.shape_cast %216 : vector<16x16xf32> to vector<2x8x16xf32>
    %218 = vector.extract_strided_slice %215 {offsets = [0, 32], sizes = [16, 16], strides = [1, 1]} : vector<16x128xf32> to vector<16x16xf32>
    %219 = vector.shape_cast %218 : vector<16x16xf32> to vector<2x8x16xf32>
    %220 = vector.extract_strided_slice %215 {offsets = [0, 64], sizes = [16, 16], strides = [1, 1]} : vector<16x128xf32> to vector<16x16xf32>
    %221 = vector.shape_cast %220 : vector<16x16xf32> to vector<2x8x16xf32>
    %222 = vector.extract_strided_slice %215 {offsets = [0, 16], sizes = [16, 16], strides = [1, 1]} : vector<16x128xf32> to vector<16x16xf32>
    %223 = vector.shape_cast %222 : vector<16x16xf32> to vector<2x8x16xf32>
    %224 = vector.extract_strided_slice %215 {offsets = [0, 48], sizes = [16, 16], strides = [1, 1]} : vector<16x128xf32> to vector<16x16xf32>
    %225 = vector.shape_cast %224 : vector<16x16xf32> to vector<2x8x16xf32>
    %226 = vector.extract_strided_slice %215 {offsets = [0, 80], sizes = [16, 16], strides = [1, 1]} : vector<16x128xf32> to vector<16x16xf32>
    %227 = vector.shape_cast %226 : vector<16x16xf32> to vector<2x8x16xf32>
    %228 = tpu.concatenate %217, %223 in 0 : vector<2x8x16xf32>, vector<2x8x16xf32> -> vector<4x8x16xf32>
    %229 = tpu.concatenate %219, %225 in 0 : vector<2x8x16xf32>, vector<2x8x16xf32> -> vector<4x8x16xf32>
    %230 = tpu.concatenate %221, %227 in 0 : vector<2x8x16xf32>, vector<2x8x16xf32> -> vector<4x8x16xf32>
    "tpu.trace_start"() <{level = 10 : i32, message = "nqd,nkd->nqk"}> : () -> ()
    %cst_97 = arith.constant dense<0.000000e+00> : vector<4x8x8xf32>
    %231 = tpu.matmul %228, %229, %cst_97 {dimension_numbers = #tpu.dot_dimension_numbers<[2], [2], [1], [1], [0, 0, 0, 1, 1, 1], [0], [0]>} : vector<4x8x16xf32>, vector<4x8x16xf32>, vector<4x8x8xf32> -> vector<4x8x8xf32>
    "tpu.trace_stop"() : () -> ()
    %cst_98 = arith.constant 2.500000e-01 : f32
    %232 = vector.broadcast %cst_98 : f32 to vector<4x8x8xf32>
    %233 = arith.mulf %231, %232 : vector<4x8x8xf32>
    %234 = arith.addf %233, %51 : vector<4x8x8xf32>
    %cst_99 = arith.constant dense<0xFF800000> : vector<4x8xf32>
    %235 = vector.multi_reduction <maximumf>, %234, %cst_99 [2] : vector<4x8x8xf32> to vector<4x8xf32>
    %236 = vector.shape_cast %235 : vector<4x8xf32> to vector<4x8x1xf32>
    %237 = vector.broadcast %236 : vector<4x8x1xf32> to vector<4x8x8xf32>
    %238 = arith.subf %234, %237 : vector<4x8x8xf32>
    %239 = math.exp %238 : vector<4x8x8xf32>
    %cst_100 = arith.constant dense<0.000000e+00> : vector<4x8xf32>
    %240 = vector.multi_reduction <add>, %239, %cst_100 [2] : vector<4x8x8xf32> to vector<4x8xf32>
    %241 = vector.shape_cast %240 : vector<4x8xf32> to vector<4x8x1xf32>
    %242 = vector.broadcast %241 : vector<4x8x1xf32> to vector<4x8x8xf32>
    %243 = arith.divf %239, %242 : vector<4x8x8xf32>
    "tpu.trace_start"() <{level = 10 : i32, message = "nqk,nkd->nqd"}> : () -> ()
    %cst_101 = arith.constant dense<0.000000e+00> : vector<4x8x16xf32>
    %244 = tpu.matmul %243, %230, %cst_101 {dimension_numbers = #tpu.dot_dimension_numbers<[2], [1], [1], [2], [0, 0, 0, 1, 1, 2], [0], [0]>} : vector<4x8x8xf32>, vector<4x8x16xf32>, vector<4x8x16xf32> -> vector<4x8x16xf32>
    "tpu.trace_stop"() : () -> ()
    %245 = vector.extract_strided_slice %244 {offsets = [0, 0, 0], sizes = [2, 8, 16], strides = [1, 1, 1]} : vector<4x8x16xf32> to vector<2x8x16xf32>
    %246 = vector.shape_cast %245 : vector<2x8x16xf32> to vector<16x16xf32>
    %247 = vector.extract_strided_slice %244 {offsets = [2, 0, 0], sizes = [2, 8, 16], strides = [1, 1, 1]} : vector<4x8x16xf32> to vector<2x8x16xf32>
    %248 = vector.shape_cast %247 : vector<2x8x16xf32> to vector<16x16xf32>
    %249 = tpu.concatenate %246, %248 in 1 : vector<16x16xf32>, vector<16x16xf32> -> vector<16x32xf32>
    %c1_102 = arith.constant 1 : index
    %c0_103 = arith.constant 0 : index
    %c0_104 = arith.constant 0 : index
    %250 = vector.load %arg9[%c1_102, %c0_103, %c0_104] : memref<2x32x32xf32, #tpu.memory_space<vmem>>, vector<1x32x32xf32>
    %251 = vector.shape_cast %250 : vector<1x32x32xf32> to vector<32x32xf32>
    %cst_105 = arith.constant dense<0.000000e+00> : vector<16x32xf32>
    %252 = tpu.matmul %249, %251, %cst_105 {dimension_numbers = #tpu.dot_dimension_numbers<[1], [0], [0], [1], [0, 0, 1, 1], [], []>} : vector<16x32xf32>, vector<32x32xf32>, vector<16x32xf32> -> vector<16x32xf32>
    %c1_106 = arith.constant 1 : index
    %c0_107 = arith.constant 0 : index
    %c0_108 = arith.constant 0 : index
    %253 = vector.load %arg10[%c1_106, %c0_107, %c0_108] : memref<2x1x32xf32, #tpu.memory_space<vmem>>, vector<1x1x32xf32>
    %254 = vector.shape_cast %253 : vector<1x1x32xf32> to vector<1x32xf32>
    %255 = vector.broadcast %254 : vector<1x32xf32> to vector<16x32xf32>
    %256 = arith.addf %252, %255 : vector<16x32xf32>
    %257 = arith.addf %256, %208 : vector<16x32xf32>
    %c1_109 = arith.constant 1 : index
    %c0_110 = arith.constant 0 : index
    %c0_111 = arith.constant 0 : index
    %258 = vector.load %arg11[%c1_109, %c0_110, %c0_111] : memref<2x1x32xf32, #tpu.memory_space<vmem>>, vector<1x1x32xf32>
    %259 = vector.shape_cast %258 : vector<1x1x32xf32> to vector<1x32xf32>
    %c1_112 = arith.constant 1 : index
    %c0_113 = arith.constant 0 : index
    %c0_114 = arith.constant 0 : index
    %260 = vector.load %arg12[%c1_112, %c0_113, %c0_114] : memref<2x1x32xf32, #tpu.memory_space<vmem>>, vector<1x1x32xf32>
    %261 = vector.shape_cast %260 : vector<1x1x32xf32> to vector<1x32xf32>
    %cst_115 = arith.constant dense<0.000000e+00> : vector<16xf32>
    %262 = vector.multi_reduction <add>, %257, %cst_115 [1] : vector<16x32xf32> to vector<16xf32>
    %263 = vector.shape_cast %262 : vector<16xf32> to vector<16x1xf32>
    %cst_116 = arith.constant 3.200000e+01 : f32
    %264 = vector.broadcast %cst_116 : f32 to vector<16x1xf32>
    %265 = arith.divf %263, %264 : vector<16x1xf32>
    %266 = vector.broadcast %265 : vector<16x1xf32> to vector<16x32xf32>
    %267 = arith.subf %257, %266 : vector<16x32xf32>
    %268 = arith.mulf %267, %267 : vector<16x32xf32>
    %cst_117 = arith.constant dense<0.000000e+00> : vector<16xf32>
    %269 = vector.multi_reduction <add>, %268, %cst_117 [1] : vector<16x32xf32> to vector<16xf32>
    %270 = vector.shape_cast %269 : vector<16xf32> to vector<16x1xf32>
    %cst_118 = arith.constant 3.200000e+01 : f32
    %271 = vector.broadcast %cst_118 : f32 to vector<16x1xf32>
    %272 = arith.divf %270, %271 : vector<16x1xf32>
    %273 = vector.broadcast %265 : vector<16x1xf32> to vector<16x32xf32>
    %274 = arith.subf %257, %273 : vector<16x32xf32>
    %cst_119 = arith.constant 9.99999996E-13 : f32
    %275 = vector.broadcast %cst_119 : f32 to vector<16x1xf32>
    %276 = arith.addf %272, %275 : vector<16x1xf32>
    %277 = math.rsqrt %276 : vector<16x1xf32>
    %278 = vector.broadcast %277 : vector<16x1xf32> to vector<16x32xf32>
    %279 = arith.mulf %274, %278 : vector<16x32xf32>
    %280 = vector.broadcast %259 : vector<1x32xf32> to vector<16x32xf32>
    %281 = arith.mulf %279, %280 : vector<16x32xf32>
    %282 = vector.broadcast %261 : vector<1x32xf32> to vector<16x32xf32>
    %283 = arith.addf %281, %282 : vector<16x32xf32>
    %c1_120 = arith.constant 1 : index
    %c0_121 = arith.constant 0 : index
    %c0_122 = arith.constant 0 : index
    %284 = vector.load %arg13[%c1_120, %c0_121, %c0_122] : memref<2x32x128xf32, #tpu.memory_space<vmem>>, vector<1x32x128xf32>
    %285 = vector.shape_cast %284 : vector<1x32x128xf32> to vector<32x128xf32>
    %cst_123 = arith.constant dense<0.000000e+00> : vector<16x128xf32>
    %286 = tpu.matmul %283, %285, %cst_123 {dimension_numbers = #tpu.dot_dimension_numbers<[1], [0], [0], [1], [0, 0, 1, 1], [], []>} : vector<16x32xf32>, vector<32x128xf32>, vector<16x128xf32> -> vector<16x128xf32>
    %c1_124 = arith.constant 1 : index
    %c0_125 = arith.constant 0 : index
    %c0_126 = arith.constant 0 : index
    %287 = vector.load %arg14[%c1_124, %c0_125, %c0_126] : memref<2x1x128xf32, #tpu.memory_space<vmem>>, vector<1x1x128xf32>
    %288 = vector.shape_cast %287 : vector<1x1x128xf32> to vector<1x128xf32>
    %289 = vector.broadcast %288 : vector<1x128xf32> to vector<16x128xf32>
    %290 = arith.addf %286, %289 : vector<16x128xf32>
    %cst_127 = arith.constant 5.000000e-01 : f32
    %291 = vector.broadcast %cst_127 : f32 to vector<16x128xf32>
    %292 = arith.mulf %291, %290 : vector<16x128xf32>
    %cst_128 = arith.constant 0.707106769 : f32
    %293 = vector.broadcast %cst_128 : f32 to vector<16x128xf32>
    %294 = arith.mulf %290, %293 : vector<16x128xf32>
    %cst_129 = arith.constant 0.000000e+00 : f32
    %295 = vector.broadcast %cst_129 : f32 to vector<16x128xf32>
    %296 = arith.cmpf oge, %294, %295 : vector<16x128xf32>
    %cst_130 = arith.constant 1.000000e+00 : f32
    %cst_131 = arith.constant -1.000000e+00 : f32
    %297 = vector.broadcast %cst_130 : f32 to vector<16x128xf32>
    %298 = vector.broadcast %cst_131 : f32 to vector<16x128xf32>
    %299 = arith.select %296, %297, %298 : vector<16x128xi1>, vector<16x128xf32>
    %300 = math.absf %294 : vector<16x128xf32>
    %cst_132 = arith.constant 0.327591091 : f32
    %301 = vector.broadcast %cst_132 : f32 to vector<16x128xf32>
    %302 = arith.mulf %301, %300 : vector<16x128xf32>
    %cst_133 = arith.constant 1.000000e+00 : f32
    %303 = vector.broadcast %cst_133 : f32 to vector<16x128xf32>
    %304 = arith.addf %303, %302 : vector<16x128xf32>
    %cst_134 = arith.constant 1.000000e+00 : f32
    %305 = vector.broadcast %cst_134 : f32 to vector<16x128xf32>
    %306 = arith.divf %305, %304 : vector<16x128xf32>
    %cst_135 = arith.constant 1.06140542 : f32
    %307 = vector.broadcast %cst_135 : f32 to vector<16x128xf32>
    %308 = arith.mulf %307, %306 : vector<16x128xf32>
    %cst_136 = arith.constant -1.45315206 : f32
    %309 = vector.broadcast %cst_136 : f32 to vector<16x128xf32>
    %310 = arith.addf %308, %309 : vector<16x128xf32>
    %311 = arith.mulf %310, %306 : vector<16x128xf32>
    %cst_137 = arith.constant 1.42141378 : f32
    %312 = vector.broadcast %cst_137 : f32 to vector<16x128xf32>
    %313 = arith.addf %311, %312 : vector<16x128xf32>
    %314 = arith.mulf %313, %306 : vector<16x128xf32>
    %cst_138 = arith.constant -0.284496725 : f32
    %315 = vector.broadcast %cst_138 : f32 to vector<16x128xf32>
    %316 = arith.addf %314, %315 : vector<16x128xf32>
    %317 = arith.mulf %316, %306 : vector<16x128xf32>
    %cst_139 = arith.constant 0.254829586 : f32
    %318 = vector.broadcast %cst_139 : f32 to vector<16x128xf32>
    %319 = arith.addf %317, %318 : vector<16x128xf32>
    %320 = arith.mulf %319, %306 : vector<16x128xf32>
    %cst_140 = arith.constant 0.000000e+00 : f32
    %321 = vector.broadcast %cst_140 : f32 to vector<16x128xf32>
    %322 = arith.subf %321, %300 : vector<16x128xf32>
    %323 = arith.mulf %322, %300 : vector<16x128xf32>
    %324 = math.exp %323 : vector<16x128xf32>
    %325 = arith.mulf %320, %324 : vector<16x128xf32>
    %cst_141 = arith.constant 1.000000e+00 : f32
    %326 = vector.broadcast %cst_141 : f32 to vector<16x128xf32>
    %327 = arith.subf %326, %325 : vector<16x128xf32>
    %328 = arith.mulf %299, %327 : vector<16x128xf32>
    %cst_142 = arith.constant 1.000000e+00 : f32
    %329 = vector.broadcast %cst_142 : f32 to vector<16x128xf32>
    %330 = arith.addf %329, %328 : vector<16x128xf32>
    %331 = arith.mulf %292, %330 : vector<16x128xf32>
    %c1_143 = arith.constant 1 : index
    %c0_144 = arith.constant 0 : index
    %c0_145 = arith.constant 0 : index
    %332 = vector.load %arg15[%c1_143, %c0_144, %c0_145] : memref<2x128x32xf32, #tpu.memory_space<vmem>>, vector<1x128x32xf32>
    %333 = vector.shape_cast %332 : vector<1x128x32xf32> to vector<128x32xf32>
    %cst_146 = arith.constant dense<0.000000e+00> : vector<16x32xf32>
    %334 = tpu.matmul %331, %333, %cst_146 {dimension_numbers = #tpu.dot_dimension_numbers<[1], [0], [0], [1], [0, 0, 1, 1], [], []>} : vector<16x128xf32>, vector<128x32xf32>, vector<16x32xf32> -> vector<16x32xf32>
    %c1_147 = arith.constant 1 : index
    %c0_148 = arith.constant 0 : index
    %c0_149 = arith.constant 0 : index
    %335 = vector.load %arg16[%c1_147, %c0_148, %c0_149] : memref<2x1x32xf32, #tpu.memory_space<vmem>>, vector<1x1x32xf32>
    %336 = vector.shape_cast %335 : vector<1x1x32xf32> to vector<1x32xf32>
    %337 = vector.broadcast %336 : vector<1x32xf32> to vector<16x32xf32>
    %338 = arith.addf %334, %337 : vector<16x32xf32>
    %339 = arith.addf %338, %283 : vector<16x32xf32>
    %c1_150 = arith.constant 1 : index
    %c0_151 = arith.constant 0 : index
    %c0_152 = arith.constant 0 : index
    %340 = vector.load %arg17[%c1_150, %c0_151, %c0_152] : memref<2x1x32xf32, #tpu.memory_space<vmem>>, vector<1x1x32xf32>
    %341 = vector.shape_cast %340 : vector<1x1x32xf32> to vector<1x32xf32>
    %c1_153 = arith.constant 1 : index
    %c0_154 = arith.constant 0 : index
    %c0_155 = arith.constant 0 : index
    %342 = vector.load %arg18[%c1_153, %c0_154, %c0_155] : memref<2x1x32xf32, #tpu.memory_space<vmem>>, vector<1x1x32xf32>
    %343 = vector.shape_cast %342 : vector<1x1x32xf32> to vector<1x32xf32>
    %cst_156 = arith.constant dense<0.000000e+00> : vector<16xf32>
    %344 = vector.multi_reduction <add>, %339, %cst_156 [1] : vector<16x32xf32> to vector<16xf32>
    %345 = vector.shape_cast %344 : vector<16xf32> to vector<16x1xf32>
    %cst_157 = arith.constant 3.200000e+01 : f32
    %346 = vector.broadcast %cst_157 : f32 to vector<16x1xf32>
    %347 = arith.divf %345, %346 : vector<16x1xf32>
    %348 = vector.broadcast %347 : vector<16x1xf32> to vector<16x32xf32>
    %349 = arith.subf %339, %348 : vector<16x32xf32>
    %350 = arith.mulf %349, %349 : vector<16x32xf32>
    %cst_158 = arith.constant dense<0.000000e+00> : vector<16xf32>
    %351 = vector.multi_reduction <add>, %350, %cst_158 [1] : vector<16x32xf32> to vector<16xf32>
    %352 = vector.shape_cast %351 : vector<16xf32> to vector<16x1xf32>
    %cst_159 = arith.constant 3.200000e+01 : f32
    %353 = vector.broadcast %cst_159 : f32 to vector<16x1xf32>
    %354 = arith.divf %352, %353 : vector<16x1xf32>
    %355 = vector.broadcast %347 : vector<16x1xf32> to vector<16x32xf32>
    %356 = arith.subf %339, %355 : vector<16x32xf32>
    %cst_160 = arith.constant 9.99999996E-13 : f32
    %357 = vector.broadcast %cst_160 : f32 to vector<16x1xf32>
    %358 = arith.addf %354, %357 : vector<16x1xf32>
    %359 = math.rsqrt %358 : vector<16x1xf32>
    %360 = vector.broadcast %359 : vector<16x1xf32> to vector<16x32xf32>
    %361 = arith.mulf %356, %360 : vector<16x32xf32>
    %362 = vector.broadcast %341 : vector<1x32xf32> to vector<16x32xf32>
    %363 = arith.mulf %361, %362 : vector<16x32xf32>
    %364 = vector.broadcast %343 : vector<1x32xf32> to vector<16x32xf32>
    %365 = arith.addf %363, %364 : vector<16x32xf32>
    %366 = vector.extract_strided_slice %365 {offsets = [0, 0], sizes = [1, 32], strides = [1, 1]} : vector<16x32xf32> to vector<1x32xf32>
    %367 = vector.extract_strided_slice %365 {offsets = [8, 0], sizes = [1, 32], strides = [1, 1]} : vector<16x32xf32> to vector<1x32xf32>
    %368 = tpu.concatenate %366, %367 in 0 : vector<1x32xf32>, vector<1x32xf32> -> vector<2x32xf32>
    %c0_161 = arith.constant 0 : index
    %c0_162 = arith.constant 0 : index
    %369 = vector.load %arg19[%c0_161, %c0_162] : memref<32x32xf32, #tpu.memory_space<vmem>>, vector<32x32xf32>
    %cst_163 = arith.constant dense<0.000000e+00> : vector<2x32xf32>
    %370 = tpu.matmul %368, %369, %cst_163 {dimension_numbers = #tpu.dot_dimension_numbers<[1], [0], [0], [1], [0, 0, 1, 1], [], []>} : vector<2x32xf32>, vector<32x32xf32>, vector<2x32xf32> -> vector<2x32xf32>
    %c0_164 = arith.constant 0 : index
    %c0_165 = arith.constant 0 : index
    %371 = vector.load %arg20[%c0_164, %c0_165] : memref<1x32xf32, #tpu.memory_space<vmem>>, vector<1x32xf32>
    %372 = vector.broadcast %371 : vector<1x32xf32> to vector<2x32xf32>
    %373 = arith.addf %370, %372 : vector<2x32xf32>
    %374 = math.tanh %373 : vector<2x32xf32>
    %c0_166 = arith.constant 0 : index
    %c0_167 = arith.constant 0 : index
    %375 = vector.load %arg21[%c0_166, %c0_167] : memref<32x256xf32, #tpu.memory_space<vmem>>, vector<32x256xf32>
    %cst_168 = arith.constant dense<0.000000e+00> : vector<2x256xf32>
    %376 = tpu.matmul %374, %375, %cst_168 {dimension_numbers = #tpu.dot_dimension_numbers<[1], [0], [0], [1], [0, 0, 1, 1], [], []>} : vector<2x32xf32>, vector<32x256xf32>, vector<2x256xf32> -> vector<2x256xf32>
    %c0_169 = arith.constant 0 : index
    %c0_170 = arith.constant 0 : index
    %377 = vector.load %arg22[%c0_169, %c0_170] : memref<1x256xf32, #tpu.memory_space<vmem>>, vector<1x256xf32>
    %378 = vector.broadcast %377 : vector<1x256xf32> to vector<2x256xf32>
    %379 = arith.addf %376, %378 : vector<2x256xf32>
    %c0_171 = arith.constant 0 : index
    %c0_172 = arith.constant 0 : index
    %380 = vector.load %arg23[%c0_171, %c0_172] : memref<256x128xf32, #tpu.memory_space<vmem>>, vector<256x128xf32>
    %cst_173 = arith.constant dense<0.000000e+00> : vector<2x128xf32>
    %381 = tpu.matmul %379, %380, %cst_173 {dimension_numbers = #tpu.dot_dimension_numbers<[1], [0], [0], [1], [0, 0, 1, 1], [], []>} : vector<2x256xf32>, vector<256x128xf32>, vector<2x128xf32> -> vector<2x128xf32>
    %c0_174 = arith.constant 0 : index
    %c0_175 = arith.constant 0 : index
    %382 = vector.load %arg24[%c0_174, %c0_175] : memref<1x128xf32, #tpu.memory_space<vmem>>, vector<1x128xf32>
    %383 = vector.broadcast %382 : vector<1x128xf32> to vector<2x128xf32>
    %384 = arith.addf %381, %383 : vector<2x128xf32>
    %c0_176 = arith.constant 0 : index
    %c0_177 = arith.constant 0 : index
    %385 = vector.load %arg25[%c0_176, %c0_177] : memref<2x128xf32, #tpu.memory_space<vmem>>, vector<2x128xf32>
    tpu.vector_store %arg25[%c0_176, %c0_177], %384 {strides = array<i32>} : memref<2x128xf32, #tpu.memory_space<vmem>>, vector<2x128xf32>,
    return
  }
}

</mosaic_0001>

<bundles_post_ra>
// kernel: tpu_custom_call.1
= control target key start
LH: loop header
LB: loop body
LE: loop exit
PB: predicated region body
PF: predicated region fallthrough
CT: control target
= control target key end

     0   :  { %s5034_s0 = inlined_call_operand.vmem [shape: s32[16,1], index: 0, kind: input, shape index: {}]   ;;  %s5035_s1 = inlined_call_operand.vmem [shape: s32[2,8], index: 1, kind: input, shape index: {}]   ;;  %s5036_s2 = inlined_call_operand.vmem [shape: f32[128,32], index: 2, kind: input, shape index: {}]   ;;  %s5037_s3 = inlined_call_operand.hbm [shape: f32[16,32], index: 3, kind: input, shape index: {}]   ;;  %s5038_s4 = inlined_call_operand.hbm [shape: f32[2,32], index: 4, kind: input, shape index: {}]   ;;  %s5039_s5 = inlined_call_operand.hbm [shape: f32[1,32], index: 5, kind: input, shape index: {}]   ;;  %s5040_s6 = inlined_call_operand.hbm [shape: f32[1,32], index: 6, kind: input, shape index: {}]   ;;  %s5041_s7 = inlined_call_operand.vmem [shape: f32[2,32,128], index: 7, kind: input, shape index: {}]   ;;  %s5042_s8 = inlined_call_operand.vmem [shape: f32[2,1,128], index: 8, kind: input, shape index: {}]   ;;  %s5043_s9 = inlined_call_operand.vmem [shape: f32[2,32,32], index: 9, kind: input, shape index: {}]   ;;  %s5044_s10 = inlined_call_operand.vmem [shape: f32[2,1,32], index: 10, kind: input, shape index: {}]   ;;  %s5045_s11 = inlined_call_operand.hbm [shape: f32[2,1,32], index: 11, kind: input, shape index: {}]   ;;  %s5046_s12 = inlined_call_operand.hbm [shape: f32[2,1,32], index: 12, kind: input, shape index: {}]   ;;  %s5047_s13 = inlined_call_operand.vmem [shape: f32[2,32,128], index: 13, kind: input, shape index: {}]   ;;  %s5048_s14 = inlined_call_operand.hbm [shape: f32[2,1,128], index: 14, kind: input, shape index: {}]   ;;  %s5049_s15 = inlined_call_operand.vmem [shape: f32[2,128,32], index: 15, kind: input, shape index: {}]   ;;  %s5050_s16 = inlined_call_operand.vmem [shape: f32[2,1,32], index: 16, kind: input, shape index: {}]   ;;  %s5051_s17 = inlined_call_operand.vmem [shape: f32[2,1,32], index: 17, kind: input, shape index: {}]   ;;  %s5052_s18 = inlined_call_operand.vmem [shape: f32[2,1,32], index: 18, kind: input, shape index: {}]   ;;  %s5053_s19 = inlined_call_operand.vmem [shape: f32[32,32], index: 19, kind: input, shape index: {}]   ;;  %s5054_s20 = inlined_call_operand.vmem [shape: f32[1,32], index: 20, kind: input, shape index: {}]   ;;  %s5055_s21 = inlined_call_operand.hbm [shape: f32[32,256], index: 21, kind: input, shape index: {}]   ;;  %s5056_s22 = inlined_call_operand.vmem [shape: f32[1,256], index: 22, kind: input, shape index: {}]   ;;  %s5057_s23 = inlined_call_operand.vmem [shape: f32[256,128], index: 23, kind: input, shape index: {}]   ;;  %s5058_s24 = inlined_call_operand.vmem [shape: f32[1,128], index: 24, kind: input, shape index: {}]   ;;  %s5059_s25 = inlined_call_operand.hbm [shape: f32[2,128], index: 25, kind: output, shape index: {}]  }
   0x1   :  { %5074 = sst [smem:[#allocation23_spill]] %s5034_s0 }
   0x2   :  { %5075 = sst [smem:[#allocation24_spill]] %s5035_s1 }
   0x3   :  { %5076 = sst [smem:[#allocation25_spill]] %s5036_s2 }
   0x4   :  { %5077 = sst [smem:[#allocation26_spill]] %s5037_s3 }
   0x5   :  { %5078 = sst [smem:[#allocation27_spill]] %s5038_s4 }
   0x6   :  { %5079 = sst [smem:[#allocation28_spill]] %s5039_s5 }
   0x7   :  { %5080 = sst [smem:[#allocation29_spill]] %s5040_s6 }
   0x8   :  { %5081 = sst [smem:[#allocation30_spill]] %s5041_s7 }
   0x9   :  { %5082 = sst [smem:[#allocation31_spill]] %s5042_s8 }
   0xa   :  { %5083 = sst [smem:[#allocation32_spill]] %s5043_s9 }
   0xb   :  { %5084 = sst [smem:[#allocation33_spill]] %s5058_s24 }
   0xc   :  { %5085 = sst [smem:[#allocation34_spill]] %s5059_s25 }
   0xd   :  { %30 = vsyncpa [#allocation3], 0 }
   0xe   :  { %31 = vsyncpa [#allocation6], 0 }
   0xf   :  { %32 = vsyncpa [#allocation9], 0 }
  0x10   :  { %33 = vsyncpa [#allocation12], 0 }
  0x11   :  { %34 = vsyncpa [#allocation15], 0 }
  0x12   :  { %35 = vsyncpa [#allocation4], 0  ;;  %s4118_s29 = smov [#allocation5]   ;;  %s4119_s6 = smov [#allocation8]  }
  0x13   :  { %s60_s2 = sshll.u32 %s4118_s29, 4  ;;  %s80_s30 = sshll.u32 %s4119_s6, 4  ;;  %s61_s2 = int_to_ptr.vmem [resolvable:$true] %s60_s2  ;;  %s81_s30 = int_to_ptr.vmem [resolvable:$true] %s80_s30 }
  0x14   :  { %s5086_s26 = sld [smem:[#allocation27_spill]] }
  0x1a   :  { %s3908_s1 = scalar_lea.hbm %s5086_s26, 32 }
  0x1b   :  { %p3909_p0 = scmp.ne.s32.totalorder %s5086_s26, %s3908_s1  ;;  %p3912_p1 = scmp.lt.u32.totalorder %s3908_s1, %s5086_s26 }
  0x1d   :  { %p3914_p2 = pnand %p3912_p1, %p3909_p0 }
  0x1f   :  { %3917 = shalt.err (!%p3914_p2)
}
  0x20   :  { %s3918_s9 = scalar_lea.vmem %s61_s2, 32  ;;  %p3923_p4 = scmp.lt.s32.totalorder %s61_s2, %s61_s2 }
  0x21   :  { %p3919_p3 = scmp.ne.s32.totalorder %s61_s2, %s3918_s9  ;;  %p3924_p5 = scmp.lt.s32.totalorder %s3918_s9, %s3918_s9 }
  0x23   :  { %p3925_p6 = por %p3924_p5, %p3923_p4 }
  0x25   :  { %p3926_p7 = pnand %p3925_p6, %p3919_p3 }
  0x27   :  { %3929 = shalt.err (!%p3926_p7)
}
  0x28   :  { %63 = dma.hbm_to_vmem [thread:$0]  %s5086_s26, 32, %s61_s2, [#allocation6]  }
  0x29   :  { %s5087_s7 = sld [smem:[#allocation29_spill]] }
  0x2f   :  { %s3930_s3 = scalar_lea.hbm %s5087_s7, 16 }
  0x30   :  { %p3931_p8 = scmp.ne.s32.totalorder %s5087_s7, %s3930_s3  ;;  %p3934_p9 = scmp.lt.u32.totalorder %s3930_s3, %s5087_s7 }
  0x32   :  { %p3936_p10 = pnand %p3934_p9, %p3931_p8 }
  0x34   :  { %3939 = shalt.err (!%p3936_p10)
}
  0x35   :  { %s3940_s28 = scalar_lea.vmem %s81_s30, 16  ;;  %s3944_s9 = scalar_lea.vmem %s81_s30, 32 }
  0x36   :  { %p3941_p11 = scmp.ne.s32.totalorder %s81_s30, %s3940_s28  ;;  %p3945_p12 = scmp.lt.s32.totalorder %s81_s30, %s81_s30 }
  0x37   :  { %p3946_p13 = scmp.lt.s32.totalorder %s3944_s9, %s3940_s28 }
  0x39   :  { %p3947_p0 = por %p3946_p13, %p3945_p12 }
  0x3b   :  { %p3948_p1 = pnand %p3947_p0, %p3941_p11 }
  0x3d   :  { %3951 = shalt.err (!%p3948_p1)
}
  0x3e   :  { %83 = dma.hbm_to_vmem [thread:$0]  %s5087_s7, 16, %s81_s30, [#allocation9]  }
  0x3f   :  { %s4120_s5 = smov [#allocation11]   ;;  %s4121_s29 = smov [#allocation2]  }
  0x40   :  { %s109_s0 = sshll.u32 %s4120_s5, 4  ;;  %s47_s6 = sshll.u32 %s4121_s29, 4  ;;  %s110_s0 = int_to_ptr.vmem [resolvable:$true] %s109_s0  ;;  %s4296_s6 = int_to_ptr.vmem [resolvable:$true] %s47_s6 }
  0x41   :  { %s3952_s27 = scalar_lea.hbm %s5046_s12, 32 }
  0x42   :  { %p3953_p2 = scmp.ne.s32.totalorder %s5046_s12, %s3952_s27  ;;  %p3956_p3 = scmp.lt.u32.totalorder %s3952_s27, %s5046_s12 }
  0x44   :  { %p3958_p4 = pnand %p3956_p3, %p3953_p2 }
  0x46   :  { %3961 = shalt.err (!%p3958_p4)
}
  0x47   :  { %s3962_s30 = scalar_lea.vmem %s110_s0, 32  ;;  %p3967_p6 = scmp.lt.s32.totalorder %s110_s0, %s110_s0 }
  0x48   :  { %p3963_p5 = scmp.ne.s32.totalorder %s110_s0, %s3962_s30  ;;  %p3968_p7 = scmp.lt.s32.totalorder %s3962_s30, %s3962_s30 }
  0x4a   :  { %p3969_p8 = por %p3968_p7, %p3967_p6 }
  0x4c   :  { %p3970_p9 = pnand %p3969_p8, %p3963_p5 }
  0x4e   :  { %3973 = shalt.err (!%p3970_p9)
}
  0x4f   :  { %s5069_s7 = smov 16   ;;  %s5071_s2 = smov 1  }
  0x50   :  { %115 = dma.hbm_to_vmem [thread:$0]  %s5046_s12, 32, %s110_s0, [#allocation12], %s5069_s7, %s5069_s7, %s5071_s2  }
  0x51   :  { %s5088_s8 = sld [smem:[#allocation26_spill]] }
  0x57   :  { %s3974_s27 = scalar_lea.hbm %s5088_s8, 256 }
  0x58   :  { %p3975_p10 = scmp.ne.s32.totalorder %s5088_s8, %s3974_s27  ;;  %p3978_p11 = scmp.lt.u32.totalorder %s3974_s27, %s5088_s8 }
  0x5a   :  { %p3980_p12 = pnand %p3978_p11, %p3975_p10 }
  0x5c   :  { %3983 = shalt.err (!%p3980_p12)
}
  0x5d   :  { %s3984_s30 = scalar_lea.vmem %s4296_s6, 256  ;;  %p3989_p0 = scmp.lt.s32.totalorder %s4296_s6, %s4296_s6 }
  0x5e   :  { %p3985_p13 = scmp.ne.s32.totalorder %s4296_s6, %s3984_s30  ;;  %p3990_p1 = scmp.lt.s32.totalorder %s3984_s30, %s3984_s30 }
  0x60   :  { %p3991_p2 = por %p3990_p1, %p3989_p0 }
  0x62   :  { %p3992_p3 = pnand %p3991_p2, %p3985_p13 }
  0x64   :  { %3995 = shalt.err (!%p3992_p3)
}
  0x65   :  { %s4124_s12 = smov 128   ;;  %s4125_s0 = smov 8  }
  0x66   :  { %53 = dma.hbm_to_vmem [thread:$0]  %s5088_s8, 256, %s4296_s6, [#allocation3], %s4124_s12, %s4124_s12, %s4125_s0  }
  0x67   :  { %s4126_s29 = smov [#allocation7]   ;;  %s4127_s27 = smov [#allocation10]  }
  0x68   :  { %s70_s3 = sshll.u32 %s4126_s29, 4  ;;  %s97_s1 = sshll.u32 %s4127_s27, 4  ;;  %s71_s3 = int_to_ptr.vmem [resolvable:$true] %s70_s3  ;;  %s4330_s1 = int_to_ptr.vmem [resolvable:$true] %s97_s1 }
  0x69   :  { %s5089_s9 = sld [smem:[#allocation28_spill]] }
  0x6f   :  { %s3996_s30 = scalar_lea.hbm %s5089_s9, 16 }
  0x70   :  { %p3997_p4 = scmp.ne.s32.totalorder %s5089_s9, %s3996_s30  ;;  %p4000_p5 = scmp.lt.u32.totalorder %s3996_s30, %s5089_s9 }
  0x72   :  { %p4002_p6 = pnand %p4000_p5, %p3997_p4 }
  0x74   :  { %4005 = shalt.err (!%p4002_p6)
}
  0x75   :  { %s4006_s6 = scalar_lea.vmem %s71_s3, 16  ;;  %s4010_s8 = scalar_lea.vmem %s71_s3, 32 }
  0x76   :  { %p4007_p7 = scmp.ne.s32.totalorder %s71_s3, %s4006_s6  ;;  %p4011_p8 = scmp.lt.s32.totalorder %s71_s3, %s71_s3 }
  0x77   :  { %p4012_p9 = scmp.lt.s32.totalorder %s4010_s8, %s4006_s6 }
  0x79   :  { %p4013_p10 = por %p4012_p9, %p4011_p8 }
  0x7b   :  { %p4014_p11 = pnand %p4013_p10, %p4007_p7 }
  0x7d   :  { %4017 = shalt.err (!%p4014_p11)
}
  0x7e   :  { %73 = dma.hbm_to_vmem [thread:$0]  %s5089_s9, 16, %s71_s3, [#allocation6]  }
  0x7f   :  { %s4018_s26 = scalar_lea.hbm %s5045_s11, 32 }
  0x80   :  { %p4019_p12 = scmp.ne.s32.totalorder %s5045_s11, %s4018_s26  ;;  %p4022_p13 = scmp.lt.u32.totalorder %s4018_s26, %s5045_s11 }
  0x82   :  { %p4024_p0 = pnand %p4022_p13, %p4019_p12 }
  0x84   :  { %4027 = shalt.err (!%p4024_p0)
}
  0x85   :  { %s4028_s27 = scalar_lea.vmem %s4330_s1, 32  ;;  %p4033_p2 = scmp.lt.s32.totalorder %s4330_s1, %s4330_s1 }
  0x86   :  { %p4029_p1 = scmp.ne.s32.totalorder %s4330_s1, %s4028_s27  ;;  %p4034_p3 = scmp.lt.s32.totalorder %s4028_s27, %s4028_s27 }
  0x88   :  { %p4035_p4 = por %p4034_p3, %p4033_p2 }
  0x8a   :  { %p4036_p5 = pnand %p4035_p4, %p4029_p1 }
  0x8c   :  { %4039 = shalt.err (!%p4036_p5)
}
  0x8d   :  { %s5090_s3 = smov 1   ;;  %s5091_s4 = smov 16  }
  0x8e   :  { %103 = dma.hbm_to_vmem [thread:$0]  %s5045_s11, 32, %s4330_s1, [#allocation9], %s5091_s4, %s5091_s4, %s5090_s3  }
  0x8f   :  { %s4128_s30 = smov [#allocation13]   ;;  %s4129_s8 = smov [#allocation14]  }
  0x90   :  { %s123_s6 = sshll.u32 %s4128_s30, 4  ;;  %s147_s12 = sshll.u32 %s4129_s8, 4  ;;  %s124_s6 = int_to_ptr.vmem [resolvable:$true] %s123_s6  ;;  %s4364_s12 = int_to_ptr.vmem [resolvable:$true] %s147_s12 }
  0x91   :  { %s4040_s2 = scalar_lea.hbm %s5048_s14, 32 }
  0x92   :  { %p4041_p6 = scmp.ne.s32.totalorder %s5048_s14, %s4040_s2  ;;  %p4044_p7 = scmp.lt.u32.totalorder %s4040_s2, %s5048_s14 }
  0x94   :  { %p4046_p8 = pnand %p4044_p7, %p4041_p6 }
  0x96   :  { %4049 = shalt.err (!%p4046_p8)
}
  0x97   :  { %s4050_s11 = scalar_lea.vmem %s124_s6, 32  ;;  %p4055_p10 = scmp.lt.s32.totalorder %s124_s6, %s124_s6 }
  0x98   :  { %p4051_p9 = scmp.ne.s32.totalorder %s124_s6, %s4050_s11  ;;  %p4056_p11 = scmp.lt.s32.totalorder %s4050_s11, %s4050_s11 }
  0x9a   :  { %p4057_p12 = por %p4056_p11, %p4055_p10 }
  0x9c   :  { %p4058_p13 = pnand %p4057_p12, %p4051_p9 }
  0x9e   :  { %4061 = shalt.err (!%p4058_p13)
}
  0x9f   :  { %129 = dma.hbm_to_vmem [thread:$0]  %s5048_s14, 32, %s124_s6, [#allocation12], %s5091_s4, %s5091_s4, %s5090_s3  }
  0xa0   :  { %s4062_s9 = scalar_lea.hbm %s5055_s21, 1024 }
  0xa1   :  { %p4063_p0 = scmp.ne.s32.totalorder %s5055_s21, %s4062_s9  ;;  %p4066_p1 = scmp.lt.u32.totalorder %s4062_s9, %s5055_s21 }
  0xa3   :  { %p4068_p2 = pnand %p4066_p1, %p4063_p0 }
  0xa5   :  { %4071 = shalt.err (!%p4068_p2)
}
  0xa6   :  { %s4072_s2 = scalar_lea.vmem %s4364_s12, 1024  ;;  %p4077_p4 = scmp.lt.s32.totalorder %s4364_s12, %s4364_s12 }
  0xa7   :  { %p4073_p3 = scmp.ne.s32.totalorder %s4364_s12, %s4072_s2  ;;  %p4078_p5 = scmp.lt.s32.totalorder %s4072_s2, %s4072_s2 }
  0xa9   :  { %p4079_p6 = por %p4078_p5, %p4077_p4 }
  0xab   :  { %p4080_p7 = pnand %p4079_p6, %p4073_p3 }
  0xad   :  { %4083 = shalt.err (!%p4080_p7)
}
  0xae   :  { %s4130_s14 = smov 256  }
  0xaf   :  { %153 = dma.hbm_to_vmem [thread:$0]  %s5055_s21, 1024, %s4364_s12, [#allocation15], %s4130_s14, %s4130_s14, %s5091_s4  }
  0xb0   :  { %4106 = dma.done.wait [#allocation3], 256  }
  0xb1   :  { %4107 = vsyncadd [#allocation3], 4294967040 }
  0xb2   :  { %4108 = dma.done.wait [#allocation6], 48  }
  0xb3   :  { %4109 = vsyncadd [#allocation6], 4294967248 }
  0xb4   :  { %4110 = dma.done.wait [#allocation9], 48  }
  0xb5   :  { %4111 = vsyncadd [#allocation9], 4294967248 }
  0xb6   :  { %4112 = dma.done.wait [#allocation12], 64  }
  0xb7   :  { %4113 = vsyncadd [#allocation12], 4294967232 }
  0xb8   :  { %4114 = dma.done.wait [#allocation15], 1024  }
  0xb9   :  { %4115 = vsyncadd [#allocation15], 4294966272  ;;  %v4131_v0 = vmov 0   ;;  %s5092_s25 = sld [smem:[#allocation23_spill]]  ;;  %s5093_s1 = sld [smem:[#allocation25_spill]]  ;;  %v186_v27 = vlaneseq  ;;  %v4132_v30 = vmov 1.0  }
  0xba   :  { %3837 = vset.pattern.permute.xlu0 %v4131_v0  ;;  %v291_v32 = vld [vmem:[#allocation2] sm:$0xff]  ;;  %v3107_v35 = vld [vmem:[#allocation5] ss:$0 sm:$0xff]  ;;  %vm303_vm2 = vcmask 261120   ;;  %s5094_s26 = sld [smem:[#allocation30_spill]]  ;;  %s5095_s28 = sld [smem:[#allocation31_spill]] }
  0xbb   :  { %v187_v28 = vand.u32 127, %v186_v27  ;;  %vm4134_vm3 = vmmov 0   ;;  %s4135_s9 = smov 112   ;;  %s4136_s30 = smov 96   ;;  %vm484_vm4 = vcmask 130048   ;;  %vm795_vm5 = vcmask 64512  }
  0xbc   :  { %s5096_s7 = sld [smem:[#allocation24_spill]]  ;;  %s4138_s2 = smov 64   ;;  %vm2793_vm10 = vcmask 1040384  }
  0xbf   :  { %v184_v1 = vld [vmem:[%s5092_s25] sm:$0xff]  ;;  %v201_v3 = vld [vmem:[%s5093_s1 + $0x8] sm:$0xff]  ;;  %v202_v4 = vld [vmem:[%s5093_s1 + $0x10] sm:$0xff] }
  0xc0   :  { %v200_v2 = vld [vmem:[%s5093_s1] sm:$0xff]  ;;  %189 = vperm.xlu0 %3837, %v184_v1   ;;  %v203_v5 = vld [vmem:[%s5093_s1 + $0x18] sm:$0xff]  ;;  %v185_v6 = vld [vmem:[%s5092_s25 + $0x8] sm:$0xff] }
  0xc1   :  { %v3623_v7 = vpack.c.bf16 %v201_v3, %v200_v2  ;;  %v3627_v8 = vpack.c.bf16 %v203_v5, %v202_v4  ;;  %v204_v9 = vld [vmem:[%s5093_s1 + $0x20] sm:$0xff]  ;;  %v205_v10 = vld [vmem:[%s5093_s1 + $0x28] sm:$0xff]  ;;  %v206_v12 = vld [vmem:[%s5093_s1 + $0x30] sm:$0xff] }
  0xc2   :  { %v3631_v11 = vpack.c.bf16 %v205_v10, %v204_v9  ;;  %v207_v13 = vld [vmem:[%s5093_s1 + $0x38] sm:$0xff]  ;;  %v208_v15 = vld [vmem:[%s5093_s1 + $0x40] sm:$0xff]  ;;  %v209_v16 = vld [vmem:[%s5093_s1 + $0x48] sm:$0xff]  ;;  %v4133_v10 = vmov 0.0  }
  0xc3   :  { %3624 = vmatprep.subr.bf16.mxu0 %v3623_v7  ;;  %v3635_v14 = vpack.c.bf16 %v207_v13, %v206_v12  ;;  %v3639_v17 = vpack.c.bf16 %v209_v16, %v208_v15  ;;  %v210_v18 = vld [vmem:[%s5093_s1 + $0x50] sm:$0xff]  ;;  %v211_v19 = vld [vmem:[%s5093_s1 + $0x58] sm:$0xff]  ;;  %v212_v21 = vld [vmem:[%s5093_s1 + $0x60] sm:$0xff]  ;;  %3407 = vmatprep.subr.mxu1 %v4133_v10 }
  0xc4   :  { %192 = vperm.xlu0 %3837, %v185_v6   ;;  %3626 = vmatpush3.bf16.msra.mxu0 %v3623_v7  ;;  %v3643_v20 = vpack.c.bf16 %v211_v19, %v210_v18  ;;  %v213_v22 = vld [vmem:[%s5093_s1 + $0x68] sm:$0xff]  ;;  %v214_v24 = vld [vmem:[%s5093_s1 + $0x70] sm:$0xff]  ;;  %v215_v25 = vld [vmem:[%s5093_s1 + $0x78] sm:$0xff]  ;;  %s5097_s1 = sld [smem:[#allocation32_spill]] }
  0xc5   :  { %3628 = vmatprep.subr.bf16.mxu0 %v3627_v8  ;;  %v3647_v23 = vpack.c.bf16 %v213_v22, %v212_v21  ;;  %v3651_v26 = vpack.c.bf16 %v215_v25, %v214_v24  ;;  %v384_v52 = vld [vmem:[%s5094_s26] sm:$0xff]  ;;  %v385_v53 = vld [vmem:[%s5094_s26 + $0x8] sm:$0xff]  ;;  %v386_v55 = vld [vmem:[%s5094_s26 + $0x10] sm:$0xff]  ;;  %3409 = vmatprep.mubr.msk.f32.mxu1 %vm4134_vm3, %v4133_v10 }
  0xc6   :  { %v3655_v54 = vpack.c.bf16 %v385_v53, %v384_v52  ;;  %v387_v56 = vld [vmem:[%s5094_s26 + $0x18] sm:$0xff]  ;;  %v3108_v1 = vld [vmem:[#allocation7] ss:$0 sm:$0xff]  ;;  %v3109_v3 = vld [vmem:[#allocation8] ss:$0 sm:$0xff] }
  0xc7   :  { %v3659_v57 = vpack.c.bf16 %v387_v56, %v386_v55  ;;  %v347_v22 = vld [vmem:[%s5096_s7] sm:$0x3] }
  0xc8   :  { %3630 = vmatpush3.bf16.msra.mxu0 %v3627_v8  ;;  %v348_v25 = vcvt.s32.f32 %v347_v22 }
  0xc9   :  { %3632 = vmatprep.subr.bf16.mxu0 %v3631_v11 }
  0xcc   :  { %3634 = vmatpush3.bf16.msra.mxu0 %v3631_v11  ;;  %v3110_v11 = vld [vmem:[%s5095_s28] ss:$0 sm:$0xff] }
  0xcd   :  { %3636 = vmatprep.subr.bf16.mxu0 %v3635_v14 }
  0xd0   :  { %3638 = vmatpush3.bf16.msra.mxu0 %v3635_v14 }
  0xd1   :  { %3640 = vmatprep.subr.bf16.mxu0 %v3639_v17 }
  0xd4   :  { %3642 = vmatpush3.bf16.msra.mxu0 %v3639_v17 }
  0xd5   :  { %3644 = vmatprep.subr.bf16.mxu0 %v3643_v20 }
  0xd8   :  { %3646 = vmatpush3.bf16.msra.mxu0 %v3643_v20 }
  0xd9   :  { %3648 = vmatprep.subr.bf16.mxu0 %v3647_v23 }
  0xdc   :  { %3650 = vmatpush3.bf16.msra.mxu0 %v3647_v23  ;;  %v4137_v23 = vmov 1966171168  }
  0xdd   :  { %3652 = vmatprep.subr.bf16.mxu0 %v3651_v26  ;;  %v353_v24 = vunpack.c.l.s4 %v4137_v23 }
  0xe0   :  { %3654 = vmatpush3.bf16.msra.mxu0 %v3651_v26  ;;  %v354_v26 = vunpack.c.0.s8 %v353_v24 }
  0xe1   :  { %3656 = vmatprep.subr.bf16.mxu0 %v3655_v54 }
 0x13f   :  { %v190_v29 = vpop.permute.xlu0 %189 }
 0x140   :  { %vm194_vm0 = vcmp.eq.s32.totalorder %v190_v29, %v187_v28  ;;  %v349_v29 = vsub.f32 1.0, %v348_v25 }
 0x141   :  { %3393 = vmatprep.mubr.msk.f32.mxu0 %vm194_vm0, %v4132_v30 }
 0x143   :  { %v193_v31 = vpop.permute.xlu0 %192 }
 0x144   :  { %vm195_vm1 = vcmp.eq.s32.totalorder %v193_v31, %v187_v28  ;;  %v4535_v28 = vshrl.u32 %v186_v27, 7  ;;  %v350_v31 = vmul.f32 -1e+09, %v349_v29 }
 0x145   :  { %3394 = vmatmul.mubr.msk.f32.vlgmr.msra.gmra.mrb[0].mxu0 %vm195_vm1, %v4132_v30 }
 0x146   :  { %3658 = vmatpush3.bf16.msra.mxu0 %v3655_v54  ;;  %v357_v30 = vsub.s32 %v354_v26, %v4535_v28 }
 0x147   :  { %3660 = vmatprep.subr.bf16.mxu0 %v3659_v57 }
 0x14a   :  { %3662 = vmatpush3.bf16.msra.mxu0 %v3659_v57 }
 0x14b   :  { %3437 = vmatprep.subr.mxu0 %v4133_v10 }
 0x218   :  { %v3395_v33 = vpop.f32.mrb[0].mxu0 }
 0x219   :  { %v282_v34 = vpop.f32.mrb[1].mxu0  ;;  %v293_v36 = vadd.f32 %v3395_v33, %v291_v32  ;;  %v4539_v33 = vsub.s32 0, %v4535_v28 }
 0x21a   :  { %v292_v37 = vadd.f32 %v291_v32, %v282_v34  ;;  %v358_v32 = vrot.slane %v350_v31, %v357_v30 }
 0x21b   :  { %v300_v40 = vadd.f32 %v3107_v35, %v293_v36 }
 0x21c   :  { %v299_v38 = vadd.f32 %v3107_v35, %v292_v37  ;;  %v366_v34 = vrot.slane %v358_v32, %v357_v30  ;;  %v359_v35 = vcombine.high %v358_v32, %v358_v32 }
 0x21d   :  { %v307_v41 = vsel %vm303_vm2, %v300_v40, 0.0 }
 0x21e   :  { %v304_v39 = vsel %vm303_vm2, %v299_v38, 0.0  ;;  %v4542_v36 = vrot.slane %v366_v34, %v4539_v33  ;;  %v373_v37 = vrot.slane %v359_v35, %v357_v30 }
 0x21f   :  { %305 = vadd.xlane.f32.xlu1 %v304_v39 }
 0x223   :  { %308 = vadd.xlane.f32.xlu1 %v307_v41  ;;  %v4546_v41 = vrot.slane %v373_v37, %v4539_v33  ;;  %v1154_v37 = vld [vmem:[%s5097_s1] sm:$0xff] }
 0x2ac   :  { %v306_v42 = vpop.xlane.xlu1 %305 }
 0x2ad   :  { %v311_v43 = vmul.f32 0.03125, %v306_v42 }
 0x2af   :  { %v313_v44 = vsub.f32 %v299_v38, %v311_v43 }
 0x2b0   :  { %v309_v45 = vpop.xlane.xlu1 %308 }
 0x2b1   :  { %v312_v46 = vmul.f32 0.03125, %v309_v45  ;;  %v315_v47 = vmul.f32 %v313_v44, %v313_v44 }
 0x2b3   :  { %v314_v48 = vsub.f32 %v300_v40, %v312_v46  ;;  %v317_v49 = vsel %vm303_vm2, %v315_v47, 0.0 }
 0x2b4   :  { %318 = vadd.xlane.f32.xlu0 %v317_v49 }
 0x2b5   :  { %v316_v50 = vmul.f32 %v314_v48, %v314_v48 }
 0x2b7   :  { %v320_v51 = vsel %vm303_vm2, %v316_v50, 0.0 }
 0x2b8   :  { %321 = vadd.xlane.f32.xlu1 %v320_v51 }
 0x341   :  { %v319_v58 = vpop.xlane.xlu0 %318 }
 0x342   :  { %v323_v59 = vmul.f32 0.03125, %v319_v58 }
 0x344   :  { %v325_v60 = vadd.f32 1e-12, %v323_v59 }
 0x345   :  { %v322_v61 = vpop.xlane.xlu1 %321 }
 0x346   :  { %3838 = vrsqrt.f32 %v325_v60  ;;  %v324_v62 = vmul.f32 0.03125, %v322_v61 }
 0x348   :  { %v326_v63 = vadd.f32 1e-12, %v324_v62 }
 0x34a   :  { %3840 = vrsqrt.f32 %v326_v63 }
 0x350   :  { %v3839_v0 = vpop.eup %3838 }
 0x351   :  { %v329_v2 = vmul.f32 %v3839_v0, %v313_v44 }
 0x353   :  { %v337_v4 = vmul.f32 %v3108_v1, %v329_v2 }
 0x354   :  { %v3841_v5 = vpop.eup %3840 }
 0x355   :  { %v330_v6 = vmul.f32 %v3841_v5, %v314_v48  ;;  %v4470_v7 = vadd.f32 %v3109_v3, %v337_v4 }
 0x357   :  { %v338_v8 = vmul.f32 %v3108_v1, %v330_v6  ;;  %3404 = vmatprep.mubr.msk.f32.mxu0 %vm303_vm2, %v4470_v7 }
 0x359   :  { %v4474_v9 = vadd.f32 %v3109_v3, %v338_v8 }
 0x35b   :  { %3405 = vmatmul.mubr.msk.f32.vlgmr.msra.gmra.mrb[2].mxu0 %vm303_vm2, %v4474_v9 }
 0x35c   :  { %3439 = vmatprep.mubr.msk.f32.mxu0 %vm4134_vm3, %v4133_v10 }
 0x42e   :  { %v3406_v12 = vpop.f32.mrb[2].mxu0 }
 0x42f   :  { %v467_v13 = vpop.f32.mrb[3].mxu0  ;;  %v4491_v15 = vadd.f32 %v3406_v12, %v3110_v11 }
 0x430   :  { %v4487_v14 = vadd.f32 %v3110_v11, %v467_v13 }
 0x432   :  { %478 = vrot.lane.b32.xlu1 %v4487_v14, %s4135_s9 }
 0x436   :  { %480 = vrot.lane.b32.xlu1 %v4491_v15, %s4135_s9 }
 0x43a   :  { %482 = vrot.lane.b32.xlu1 %v4487_v14, %s4136_s30 }
 0x43e   :  { %559 = vrot.lane.b32.xlu1 %v4491_v15, %s4136_s30 }
 0x4a4   :  { %v4499_v16 = vpop.permute.xlu1 %478 }
 0x4a5   :  { %635 = vrot.lane.b32.xlu0 %v4499_v16, %s4136_s30 }
 0x4a8   :  { %v4503_v17 = vpop.permute.xlu1 %480 }
 0x4a9   :  { %711 = vrot.lane.b32.xlu1 %v4503_v17, %s4136_s30 }
 0x4ac   :  { %v483_v18 = vpop.permute.xlu1 %482 }
 0x4ad   :  { %3408 = vmatpush3.xpose.msk.msra.mxu1 %vm484_vm4, %v483_v18 }
 0x4ae   :  { %3412 = vmatprep.subr.mxu1 %v4133_v10 }
 0x4b0   :  { %3410 = vmatmul.mubr.msk.f32.vlgmr.msra.gmra.mrb[0].mxu1 %vm484_vm4, %v4487_v14  ;;  %v560_v19 = vpop.permute.xlu1 %559 }
 0x4b1   :  { %3413 = vmatpush3.xpose.msk.msra.mxu1 %vm484_vm4, %v560_v19  ;;  %3414 = vmatprep.mubr.msk.f32.mxu1 %vm4134_vm3, %v4133_v10 }
 0x4b2   :  { %3417 = vmatprep.subr.mxu1 %v4133_v10 }
 0x4b4   :  { %3415 = vmatmul.mubr.msk.f32.vlgmr.msra.gmra.mrb[2].mxu1 %vm484_vm4, %v4491_v15 }
 0x4b5   :  { %3419 = vmatprep.mubr.msk.f32.mxu1 %vm4134_vm3, %v4133_v10 }
 0x517   :  { %v636_v20 = vpop.permute.xlu0 %635 }
 0x518   :  { %3418 = vmatpush3.xpose.msk.msra.mxu1 %vm484_vm4, %v636_v20 }
 0x519   :  { %3422 = vmatprep.subr.mxu1 %v4133_v10 }
 0x51b   :  { %3420 = vmatmul.mubr.msk.f32.vlgmr.msra.gmra.mrb[4].mxu1 %vm484_vm4, %v4499_v16  ;;  %v712_v21 = vpop.permute.xlu1 %711 }
 0x51c   :  { %3423 = vmatpush3.xpose.msk.msra.mxu1 %vm484_vm4, %v712_v21  ;;  %3424 = vmatprep.mubr.msk.f32.mxu1 %vm4134_vm3, %v4133_v10 }
 0x51d   :  { %3427 = vmatprep.subr.mxu1 %v4133_v10 }
 0x51f   :  { %3425 = vmatmul.mubr.msk.f32.vlgmr.msra.gmra.mrb[6].mxu1 %vm484_vm4, %v4503_v17 }
 0x520   :  { %3429 = vmatprep.mubr.msk.f32.mxu1 %vm4134_vm3, %v4133_v10 }
 0x583   :  { %v555_v38 = vpop.f32.mrb[0].mxu1 }
 0x584   :  { %v787_v39 = vmul.f32 0.25, %v555_v38  ;;  %v3411_v40 = vpop.f32.mrb[1].mxu1  ;;  %v1155_v38 = vld [vmem:[%s5097_s1 + $0x8] sm:$0xff] }
 0x586   :  { %v791_v27 = vadd.f32 %v787_v39, %v4542_v36  ;;  %v3663_v39 = vpack.c.bf16 %v1155_v38, %v1154_v37  ;;  %v1438_v37 = vld [vmem:[%s5049_s15] sm:$0xff]  ;;  %v1439_v38 = vld [vmem:[%s5049_s15 + $0x8] sm:$0xff] }
 0x587   :  { %v631_v42 = vpop.f32.mrb[2].mxu1 }
 0x588   :  { %v788_v43 = vmul.f32 0.25, %v631_v42  ;;  %v3416_v44 = vpop.f32.mrb[3].mxu1  ;;  %v796_v45 = vsel %vm795_vm5, %v791_v27, -inf  ;;  %v1156_v42 = vld [vmem:[%s5097_s1 + $0x10] sm:$0xff] }
 0x589   :  { %797 = vmax.xlane.f32.xlu1 %v796_v45 }
 0x58a   :  { %v792_v46 = vadd.f32 %v788_v43, %v4546_v41  ;;  %v1157_v43 = vld [vmem:[%s5097_s1 + $0x18] sm:$0xff] }
 0x58b   :  { %v3667_v44 = vpack.c.bf16 %v1157_v43, %v1156_v42  ;;  %v1442_v43 = vld [vmem:[%s5049_s15 + $0x20] sm:$0xff] }
 0x58c   :  { %v799_v47 = vsel %vm795_vm5, %v792_v46, -inf }
 0x58d   :  { %800 = vmax.xlane.f32.xlu0 %v799_v47 }
 0x5ee   :  { %v707_v48 = vpop.f32.mrb[4].mxu1 }
 0x5ef   :  { %v789_v49 = vmul.f32 0.25, %v707_v48  ;;  %v3421_v50 = vpop.f32.mrb[5].mxu1 }
 0x5f1   :  { %v793_v51 = vadd.f32 %v789_v49, %v4542_v36 }
 0x5f2   :  { %v783_v52 = vpop.f32.mrb[6].mxu1 }
 0x5f3   :  { %v790_v53 = vmul.f32 0.25, %v783_v52  ;;  %v3426_v54 = vpop.f32.mrb[7].mxu1  ;;  %v802_v55 = vsel %vm795_vm5, %v793_v51, -inf }
 0x5f4   :  { %803 = vmax.xlane.f32.xlu1 %v802_v55  ;;  %v3125_v55 = vld [vmem:[%s5044_s10] ss:$0 sm:$0xff] }
 0x5f5   :  { %v794_v56 = vadd.f32 %v790_v53, %v4546_v41 }
 0x5f7   :  { %v805_v57 = vsel %vm795_vm5, %v794_v56, -inf }
 0x5f8   :  { %806 = vmax.xlane.f32.xlu1 %v805_v57 }
 0x609   :  { %840 = vrot.lane.b32.xlu1 %v4487_v14, %s4138_s2 }
 0x616   :  { %v798_v58 = vpop.xlane.xlu1 %797 }
 0x617   :  { %v808_v59 = vsub.f32 %v791_v27, %v798_v58 }
 0x619   :  { %v812_v60 = vmul.f32 1.442695, %v808_v59 }
 0x61a   :  { %v801_v61 = vpop.xlane.xlu0 %800 }
 0x61b   :  { %v809_v62 = vsub.f32 %v792_v46, %v801_v61  ;;  %3842 = vpow2.f32 %v812_v60 }
 0x61d   :  { %v814_v63 = vmul.f32 1.442695, %v809_v62 }
 0x61f   :  { %3844 = vpow2.f32 %v814_v63 }
 0x625   :  { %v3843_v0 = vpop.eup %3842 }
 0x626   :  { %v820_v3 = vsel %vm795_vm5, %v3843_v0, 0.0 }
 0x629   :  { %v3845_v1 = vpop.eup %3844 }
 0x62a   :  { %v823_v2 = vsel %vm795_vm5, %v3845_v1, 0.0 }
 0x62b   :  { %824 = vadd.xlane.f32.xlu0 %v823_v2 }
 0x62d   :  { %821 = vadd.xlane.f32.xlu1 %v820_v3 }
 0x681   :  { %v804_v4 = vpop.xlane.xlu1 %803 }
 0x682   :  { %v810_v5 = vsub.f32 %v793_v51, %v804_v4 }
 0x684   :  { %v816_v6 = vmul.f32 1.442695, %v810_v5 }
 0x685   :  { %v807_v8 = vpop.xlane.xlu1 %806 }
 0x686   :  { %3846 = vpow2.f32 %v816_v6  ;;  %v811_v11 = vsub.f32 %v794_v56, %v807_v8 }
 0x688   :  { %v818_v12 = vmul.f32 1.442695, %v811_v11 }
 0x689   :  { %v841_v13 = vpop.permute.xlu1 %840 }
 0x68a   :  { %3848 = vpow2.f32 %v818_v12  ;;  %3428 = vmatpush3.msra.mxu1 %v841_v13  ;;  %v1293_v12 = vld [vmem:[%s5047_s13 + $0x8] sm:$0xff] }
 0x68b   :  { %3432 = vmatprep.subr.mxu1 %v4133_v10 }
 0x690   :  { %v3847_v14 = vpop.eup %3846 }
 0x691   :  { %v826_v18 = vsel %vm795_vm5, %v3847_v14, 0.0 }
 0x692   :  { %827 = vadd.xlane.f32.xlu1 %v826_v18  ;;  %v1295_v18 = vld [vmem:[%s5047_s13 + $0x18] sm:$0xff] }
 0x694   :  { %v3849_v19 = vpop.eup %3848 }
 0x695   :  { %v829_v20 = vsel %vm795_vm5, %v3849_v19, 0.0 }
 0x696   :  { %830 = vadd.xlane.f32.xlu0 %v829_v20 }
 0x6a3   :  { %992 = vrot.lane.b32.xlu1 %v4499_v16, %s4138_s2 }
 0x6a7   :  { %1068 = vrot.lane.b32.xlu1 %v4503_v17, %s4138_s2 }
 0x6ac   :  { %916 = vrot.lane.b32.xlu0 %v4491_v15, %s4138_s2 }
 0x6b8   :  { %v825_v24 = vpop.xlane.xlu0 %824 }
 0x6ba   :  { %v822_v21 = vpop.xlane.xlu1 %821 }
 0x6bb   :  { %3850 = vrcp.f32 %v822_v21 }
 0x6bc   :  { %3852 = vrcp.f32 %v825_v24 }
 0x6c5   :  { %v3851_v22 = vpop.eup %3850 }
 0x6c6   :  { %v833_v23 = vmul.f32 %v3851_v22, %v3843_v0  ;;  %v3853_v29 = vpop.eup %3852 }
 0x6c7   :  { %v835_v17 = vmul.f32 %v3853_v29, %v3845_v1 }
 0x6c8   :  { %3430 = vmatmul.mubr.msk.f32.vlgmr.msra.gmra.mrb[8].mxu1 %vm795_vm5, %v833_v23 }
 0x6c9   :  { %3434 = vmatprep.mubr.msk.f32.mxu1 %vm4134_vm3, %v4133_v10 }
 0x71f   :  { %v828_v25 = vpop.xlane.xlu1 %827 }
 0x720   :  { %3854 = vrcp.f32 %v828_v25 }
 0x723   :  { %v831_v16 = vpop.xlane.xlu0 %830  ;;  %v993_v26 = vpop.permute.xlu1 %992 }
 0x724   :  { %3856 = vrcp.f32 %v831_v16  ;;  %3438 = vmatpush3.msra.mxu0 %v993_v26  ;;  %v3128_v26 = vld [vmem:[#allocation10] ss:$0 sm:$0xff] }
 0x725   :  { %3664 = vmatprep.subr.bf16.mxu0 %v3663_v39 }
 0x727   :  { %v917_v15 = vpop.permute.xlu0 %916  ;;  %v1069_v30 = vpop.permute.xlu1 %1068 }
 0x728   :  { %3433 = vmatpush3.msra.mxu1 %v917_v15 }
 0x729   :  { %3435 = vmatmul.mubr.msk.f32.vlgmr.msra.gmra.mrb[10].mxu1 %vm795_vm5, %v835_v17  ;;  %3442 = vmatprep.subr.mxu1 %v4133_v10  ;;  %v3129_v17 = vld [vmem:[#allocation11] ss:$0 sm:$0xff] }
 0x72a   :  { %v3855_v31 = vpop.eup %3854  ;;  %3443 = vmatpush3.msra.mxu1 %v1069_v30  ;;  %3444 = vmatprep.mubr.msk.f32.mxu1 %vm4134_vm3, %v4133_v10 }
 0x72b   :  { %v837_v32 = vmul.f32 %v3855_v31, %v3847_v14  ;;  %v1294_v14 = vld [vmem:[%s5047_s13 + $0x10] sm:$0xff] }
 0x72d   :  { %3440 = vmatmul.mubr.msk.f32.vlgmr.msra.gmra.mrb[4].mxu0 %vm795_vm5, %v837_v32 }
 0x72e   :  { %v3857_v34 = vpop.eup %3856  ;;  %3666 = vmatpush3.bf16.msra.mxu0 %v3663_v39  ;;  %v3679_v39 = vpack.c.bf16 %v1439_v38, %v1438_v37 }
 0x72f   :  { %v839_v35 = vmul.f32 %v3857_v34, %v3849_v19  ;;  %3668 = vmatprep.subr.bf16.mxu0 %v3667_v44  ;;  %v3675_v19 = vpack.c.bf16 %v1295_v18, %v1294_v14 }
 0x731   :  { %3445 = vmatmul.mubr.msk.f32.vlgmr.msra.gmra.mrb[12].mxu1 %vm795_vm5, %v839_v35 }
 0x732   :  { %3670 = vmatpush3.bf16.msra.mxu0 %v3667_v44  ;;  %v1443_v44 = vld [vmem:[%s5049_s15 + $0x28] sm:$0xff] }
 0x733   :  { %3680 = vmatprep.subr.bf16.mxu0 %v3679_v39 }
 0x79b   :  { %v912_v40 = vpop.f32.mrb[8].mxu1 }
 0x79c   :  { %v3431_v27 = vpop.f32.mrb[9].mxu1 }
 0x79d   :  { %v1441_v27 = vld [vmem:[%s5049_s15 + $0x18] sm:$0xff] }
 0x7fc   :  { %v988_v45 = vpop.f32.mrb[10].mxu1 }
 0x7fd   :  { %v3436_v46 = vpop.f32.mrb[11].mxu1 }
 0x7fe   :  { %v1444_v46 = vld [vmem:[%s5049_s15 + $0x30] sm:$0xff] }
 0x800   :  { %v1064_v47 = vpop.f32.mrb[4].mxu0 }
 0x801   :  { %1146 = vrot.lane.b32.xlu0 %v1064_v47, %s5091_s4  ;;  %v3441_v48 = vpop.f32.mrb[5].mxu0  ;;  %v1445_v47 = vld [vmem:[%s5049_s15 + $0x38] sm:$0xff] }
 0x802   :  { %v3691_v48 = vpack.c.bf16 %v1445_v47, %v1444_v46 }
 0x804   :  { %v1140_v49 = vpop.f32.mrb[12].mxu1 }
 0x805   :  { %1148 = vrot.lane.b32.xlu1 %v1140_v49, %s5091_s4  ;;  %v3446_v50 = vpop.f32.mrb[13].mxu1  ;;  %v1446_v49 = vld [vmem:[%s5049_s15 + $0x40] sm:$0xff] }
 0x806   :  { %v1447_v50 = vld [vmem:[%s5049_s15 + $0x48] sm:$0xff] }
 0x873   :  { %v1147_v51 = vpop.permute.xlu0 %1146 }
 0x874   :  { %v1152_v52 = vsel %vm484_vm4, %v912_v40, %v1147_v51  ;;  %v1440_v40 = vld [vmem:[%s5049_s15 + $0x10] sm:$0xff]  ;;  %v3695_v51 = vpack.c.bf16 %v1447_v50, %v1446_v49 }
 0x875   :  { %3455 = vmatprep.mubr.msk.f32.mxu0 %vm303_vm2, %v1152_v52  ;;  %v3683_v42 = vpack.c.bf16 %v1441_v27, %v1440_v40  ;;  %v1448_v52 = vld [vmem:[%s5049_s15 + $0x50] sm:$0xff] }
 0x877   :  { %v1149_v53 = vpop.permute.xlu1 %1148 }
 0x878   :  { %v1153_v54 = vsel %vm484_vm4, %v988_v45, %v1149_v53  ;;  %v3687_v45 = vpack.c.bf16 %v1443_v44, %v1442_v43  ;;  %v1449_v53 = vld [vmem:[%s5049_s15 + $0x58] sm:$0xff] }
 0x879   :  { %3456 = vmatmul.mubr.msk.f32.vlgmr.msra.gmra.mrb[6].mxu0 %vm303_vm2, %v1153_v54  ;;  %v3699_v54 = vpack.c.bf16 %v1449_v53, %v1448_v52 }
 0x87a   :  { %3682 = vmatpush3.bf16.msra.mxu0 %v3679_v39 }
 0x87b   :  { %3684 = vmatprep.subr.bf16.mxu0 %v3683_v42 }
 0x87e   :  { %3686 = vmatpush3.bf16.msra.mxu0 %v3683_v42 }
 0x87f   :  { %3688 = vmatprep.subr.bf16.mxu0 %v3687_v45 }
 0x882   :  { %3690 = vmatpush3.bf16.msra.mxu0 %v3687_v45 }
 0x883   :  { %3692 = vmatprep.subr.bf16.mxu0 %v3691_v48 }
 0x886   :  { %3694 = vmatpush3.bf16.msra.mxu0 %v3691_v48  ;;  %v4139_v48 = vmov -1.0  }
 0x887   :  { %3696 = vmatprep.subr.bf16.mxu0 %v3695_v51 }
 0x88a   :  { %3698 = vmatpush3.bf16.msra.mxu0 %v3695_v51 }
 0x88b   :  { %3700 = vmatprep.subr.bf16.mxu0 %v3699_v54 }
 0x88e   :  { %3702 = vmatpush3.bf16.msra.mxu0 %v3699_v54 }
 0x94c   :  { %v3457_v56 = vpop.f32.mrb[6].mxu0 }
 0x94d   :  { %v1243_v57 = vadd.f32 %v3457_v56, %v3125_v55  ;;  %v1237_v58 = vpop.f32.mrb[7].mxu0  ;;  %v1451_v56 = vld [vmem:[%s5049_s15 + $0x68] sm:$0xff] }
 0x94e   :  { %v1238_v59 = vadd.f32 %v3125_v55, %v1237_v58  ;;  %v1450_v55 = vld [vmem:[%s5049_s15 + $0x60] sm:$0xff]  ;;  %v1452_v58 = vld [vmem:[%s5049_s15 + $0x70] sm:$0xff] }
 0x94f   :  { %v1247_v60 = vadd.f32 %v1243_v57, %v4474_v9  ;;  %v3703_v57 = vpack.c.bf16 %v1451_v56, %v1450_v55 }
 0x950   :  { %v1246_v61 = vadd.f32 %v1238_v59, %v4470_v7  ;;  %v1292_v7 = vld [vmem:[%s5047_s13] sm:$0xff]  ;;  %v1453_v59 = vld [vmem:[%s5049_s15 + $0x78] sm:$0xff] }
 0x951   :  { %v1253_v62 = vsel %vm303_vm2, %v1247_v60, 0.0  ;;  %v3671_v13 = vpack.c.bf16 %v1293_v12, %v1292_v7  ;;  %3704 = vmatprep.subr.bf16.mxu0 %v3703_v57 }
 0x952   :  { %1254 = vadd.xlane.f32.xlu1 %v1253_v62  ;;  %v1250_v63 = vsel %vm303_vm2, %v1246_v61, 0.0  ;;  %3706 = vmatpush3.bf16.msra.mxu0 %v3703_v57 }
 0x953   :  { %1251 = vadd.xlane.f32.xlu0 %v1250_v63  ;;  %3672 = vmatprep.subr.bf16.mxu1 %v3671_v13 }
 0x954   :  { %3674 = vmatpush3.bf16.msra.mxu1 %v3671_v13 }
 0x955   :  { %3676 = vmatprep.subr.bf16.mxu1 %v3675_v19 }
 0x958   :  { %3678 = vmatpush3.bf16.msra.mxu1 %v3675_v19 }
 0x9df   :  { %v1255_v0 = vpop.xlane.xlu1 %1254 }
 0x9e0   :  { %v1257_v1 = vmul.f32 0.03125, %v1255_v0  ;;  %v1252_v2 = vpop.xlane.xlu0 %1251 }
 0x9e1   :  { %v1256_v3 = vmul.f32 0.03125, %v1252_v2 }
 0x9e2   :  { %v1259_v4 = vsub.f32 %v1247_v60, %v1257_v1  ;;  %v3707_v60 = vpack.c.bf16 %v1453_v59, %v1452_v58 }
 0x9e3   :  { %v1258_v5 = vsub.f32 %v1246_v61, %v1256_v3  ;;  %v3130_v61 = vld [vmem:[#allocation13] ss:$0 sm:$0xff] }
 0x9e4   :  { %v1261_v11 = vmul.f32 %v1259_v4, %v1259_v4  ;;  %3708 = vmatprep.subr.bf16.mxu0 %v3707_v60 }
 0x9e5   :  { %v1260_v6 = vmul.f32 %v1258_v5, %v1258_v5  ;;  %3710 = vmatpush3.bf16.msra.mxu0 %v3707_v60  ;;  %v3133_v60 = vld [vmem:[%s5050_s16] ss:$0 sm:$0xff] }
 0x9e6   :  { %v1265_v9 = vsel %vm303_vm2, %v1261_v11, 0.0  ;;  %3545 = vmatprep.subr.mxu0 %v4133_v10 }
 0x9e7   :  { %v1262_v8 = vsel %vm303_vm2, %v1260_v6, 0.0 }
 0x9e8   :  { %1263 = vadd.xlane.f32.xlu0 %v1262_v8 }
 0x9ec   :  { %1266 = vadd.xlane.f32.xlu0 %v1265_v9 }
 0xa75   :  { %v1264_v20 = vpop.xlane.xlu0 %1263 }
 0xa76   :  { %v1268_v21 = vmul.f32 0.03125, %v1264_v20 }
 0xa78   :  { %v1270_v22 = vadd.f32 1e-12, %v1268_v21 }
 0xa79   :  { %v1267_v23 = vpop.xlane.xlu0 %1266 }
 0xa7a   :  { %3858 = vrsqrt.f32 %v1270_v22  ;;  %v1269_v24 = vmul.f32 0.03125, %v1267_v23 }
 0xa7c   :  { %v1271_v25 = vadd.f32 1e-12, %v1269_v24 }
 0xa7e   :  { %3860 = vrsqrt.f32 %v1271_v25 }
 0xa84   :  { %v3859_v16 = vpop.eup %3858 }
 0xa85   :  { %v1274_v29 = vmul.f32 %v3859_v16, %v1258_v5 }
 0xa87   :  { %v1282_v15 = vmul.f32 %v3128_v26, %v1274_v29 }
 0xa88   :  { %v3861_v30 = vpop.eup %3860 }
 0xa89   :  { %v1275_v31 = vmul.f32 %v3861_v30, %v1259_v4  ;;  %v4616_v32 = vadd.f32 %v3129_v17, %v1282_v15 }
 0xa8b   :  { %v1283_v34 = vmul.f32 %v3128_v26, %v1275_v31  ;;  %3466 = vmatprep.mubr.msk.f32.mxu1 %vm303_vm2, %v4616_v32 }
 0xa8d   :  { %v4620_v35 = vadd.f32 %v3129_v17, %v1283_v34 }
 0xa8f   :  { %3467 = vmatmul.mubr.msk.f32.vlgmr.msra.gmra.mrb[14].mxu1 %vm303_vm2, %v4620_v35 }
 0xb62   :  { %v3468_v62 = vpop.f32.mrb[14].mxu1 }
 0xb63   :  { %v1381_v63 = vadd.f32 %v3468_v62, %v3130_v61  ;;  %v1375_v0 = vpop.f32.mrb[15].mxu1 }
 0xb64   :  { %v1376_v1 = vadd.f32 %v3130_v61, %v1375_v0 }
 0xb65   :  { %v1387_v2 = vmul.f32 0.70710677, %v1381_v63  ;;  %v1385_v57 = vmul.f32 0.5, %v1381_v63 }
 0xb66   :  { %v1386_v3 = vmul.f32 0.70710677, %v1376_v1  ;;  %v1384_v55 = vmul.f32 0.5, %v1376_v1 }
 0xb67   :  { %v1393_v4 = vand.u32 2147483647, %v1387_v2  ;;  %vm1389_vm6 = vcmp.ge.f32.partialorder %v1387_v2, 0.0 }
 0xb68   :  { %v1392_v5 = vand.u32 2147483647, %v1386_v3  ;;  %vm1388_vm7 = vcmp.ge.f32.partialorder %v1386_v3, 0.0  ;;  %v1391_v49 = vsel %vm1389_vm6, 1.0, %v4139_v48 }
 0xb69   :  { %v1395_v6 = vmul.f32 0.3275911, %v1393_v4  ;;  %v1421_v7 = vsub.f32 0.0, %v1393_v4  ;;  %v1390_v52 = vsel %vm1388_vm7, 1.0, %v4139_v48 }
 0xb6a   :  { %v1394_v8 = vmul.f32 0.3275911, %v1392_v5  ;;  %v1420_v12 = vsub.f32 0.0, %v1392_v5 }
 0xb6b   :  { %v1397_v11 = vadd.f32 1.0, %v1395_v6  ;;  %v1423_v14 = vmul.f32 %v1421_v7, %v1393_v4 }
 0xb6c   :  { %v1396_v9 = vadd.f32 1.0, %v1394_v8  ;;  %v1422_v20 = vmul.f32 %v1420_v12, %v1392_v5 }
 0xb6d   :  { %3862 = vrcp.f32 %v1397_v11  ;;  %v1426_v23 = vmul.f32 1.442695, %v1423_v14 }
 0xb6e   :  { %3864 = vrcp.f32 %v1396_v9  ;;  %v1424_v16 = vmul.f32 1.442695, %v1422_v20  ;;  %v3138_v20 = vld [vmem:[%s5094_s26 + $0x30] sm:$0xff] }
 0xb6f   :  { %3866 = vpow2.f32 %v1426_v23 }
 0xb70   :  { %3868 = vpow2.f32 %v1424_v16 }
 0xb77   :  { %v3863_v13 = vpop.eup %3862 }
 0xb78   :  { %v3865_v18 = vpop.eup %3864  ;;  %v1403_v19 = vmul.f32 1.0614054, %v3863_v13 }
 0xb79   :  { %v1402_v21 = vmul.f32 1.0614054, %v3865_v18  ;;  %v3867_v42 = vpop.eup %3866 }
 0xb7a   :  { %v1405_v22 = vadd.f32 -1.4531521, %v1403_v19  ;;  %v3869_v44 = vpop.eup %3868 }
 0xb7b   :  { %v1404_v24 = vadd.f32 -1.4531521, %v1402_v21  ;;  %v3139_v21 = vld [vmem:[%s5094_s26 + $0x38] sm:$0xff] }
 0xb7c   :  { %v1407_v25 = vmul.f32 %v3863_v13, %v1405_v22  ;;  %v3715_v22 = vpack.c.bf16 %v3139_v21, %v3138_v20 }
 0xb7d   :  { %v1406_v26 = vmul.f32 %v3865_v18, %v1404_v24 }
 0xb7e   :  { %v1409_v29 = vadd.f32 1.4214138, %v1407_v25 }
 0xb7f   :  { %v1408_v17 = vadd.f32 1.4214138, %v1406_v26 }
 0xb80   :  { %v1411_v15 = vmul.f32 %v3863_v13, %v1409_v29 }
 0xb81   :  { %v1410_v30 = vmul.f32 %v3865_v18, %v1408_v17 }
 0xb82   :  { %v1413_v31 = vadd.f32 -0.28449672, %v1411_v15  ;;  %v3134_v15 = vld [vmem:[%s5051_s17] ss:$0 sm:$0xff] }
 0xb83   :  { %v1412_v34 = vadd.f32 -0.28449672, %v1410_v30 }
 0xb84   :  { %v1415_v37 = vmul.f32 %v3863_v13, %v1413_v31 }
 0xb85   :  { %v1414_v38 = vmul.f32 %v3865_v18, %v1412_v34 }
 0xb86   :  { %v1417_v39 = vadd.f32 0.2548296, %v1415_v37  ;;  %v3135_v37 = vld [vmem:[%s5052_s18] ss:$0 sm:$0xff] }
 0xb87   :  { %v1416_v40 = vadd.f32 0.2548296, %v1414_v38 }
 0xb88   :  { %v1419_v27 = vmul.f32 %v3863_v13, %v1417_v39 }
 0xb89   :  { %v1418_v43 = vmul.f32 %v3865_v18, %v1416_v40  ;;  %v3137_v18 = vld [vmem:[%s5094_s26 + $0x28] sm:$0xff] }
 0xb8a   :  { %v1429_v45 = vmul.f32 %v3867_v42, %v1419_v27  ;;  %v3141_v42 = vld [vmem:[%s5095_s28 + $0x1] ss:$0 sm:$0xff] }
 0xb8b   :  { %v1428_v46 = vmul.f32 %v3869_v44, %v1418_v43 }
 0xb8c   :  { %v1431_v47 = vsub.f32 1.0, %v1429_v45 }
 0xb8d   :  { %v1430_v50 = vsub.f32 1.0, %v1428_v46 }
 0xb8e   :  { %v1433_v51 = vmul.f32 %v1431_v47, %v1391_v49 }
 0xb8f   :  { %v1432_v53 = vmul.f32 %v1430_v50, %v1390_v52 }
 0xb90   :  { %v1435_v54 = vadd.f32 1.0, %v1433_v51 }
 0xb91   :  { %v1434_v56 = vadd.f32 1.0, %v1432_v53 }
 0xb92   :  { %v1437_v59 = vmul.f32 %v1435_v54, %v1385_v57 }
 0xb93   :  { %v1436_v58 = vmul.f32 %v1434_v56, %v1384_v55 }
 0xb95   :  { %3501 = vmatprep.mubr.f32.mxu0 %v1436_v58 }
 0xb96   :  { %3502 = vmatmul.mubr.f32.vlgmr.msra.gmra.mrb[8].mxu0 %v1437_v59 }
 0xb97   :  { %3547 = vmatprep.mubr.msk.f32.mxu0 %vm4134_vm3, %v4133_v10 }
 0xc69   :  { %v3503_v61 = vpop.f32.mrb[8].mxu0 }
 0xc6a   :  { %v1533_v62 = vadd.f32 %v3503_v61, %v3133_v60  ;;  %v1527_v0 = vpop.f32.mrb[9].mxu0 }
 0xc6b   :  { %v1528_v2 = vadd.f32 %v3133_v60, %v1527_v0 }
 0xc6c   :  { %v1537_v3 = vadd.f32 %v1533_v62, %v4620_v35 }
 0xc6d   :  { %v1536_v1 = vadd.f32 %v1528_v2, %v4616_v32  ;;  %v3136_v32 = vld [vmem:[%s5094_s26 + $0x20] sm:$0xff] }
 0xc6e   :  { %v1543_v63 = vsel %vm303_vm2, %v1537_v3, 0.0  ;;  %v3711_v19 = vpack.c.bf16 %v3137_v18, %v3136_v32 }
 0xc6f   :  { %1544 = vadd.xlane.f32.xlu0 %v1543_v63  ;;  %v1540_v4 = vsel %vm303_vm2, %v1536_v1, 0.0 }
 0xc70   :  { %1541 = vadd.xlane.f32.xlu1 %v1540_v4  ;;  %3712 = vmatprep.subr.bf16.mxu1 %v3711_v19 }
 0xc71   :  { %3714 = vmatpush3.bf16.msra.mxu1 %v3711_v19 }
 0xc72   :  { %3716 = vmatprep.subr.bf16.mxu1 %v3715_v22 }
 0xc75   :  { %3718 = vmatpush3.bf16.msra.mxu1 %v3715_v22 }
 0xc76   :  { %3515 = vmatprep.subr.mxu1 %v4133_v10 }
 0xcfc   :  { %v1545_v5 = vpop.xlane.xlu0 %1544 }
 0xcfd   :  { %v1547_v6 = vmul.f32 0.03125, %v1545_v5  ;;  %v1542_v8 = vpop.xlane.xlu1 %1541 }
 0xcfe   :  { %v1546_v11 = vmul.f32 0.03125, %v1542_v8 }
 0xcff   :  { %v1549_v9 = vsub.f32 %v1537_v3, %v1547_v6 }
 0xd00   :  { %v1548_v7 = vsub.f32 %v1536_v1, %v1546_v11 }
 0xd01   :  { %v1551_v12 = vmul.f32 %v1549_v9, %v1549_v9 }
 0xd02   :  { %v1550_v13 = vmul.f32 %v1548_v7, %v1548_v7 }
 0xd03   :  { %v1555_v14 = vsel %vm303_vm2, %v1551_v12, 0.0 }
 0xd04   :  { %1556 = vadd.xlane.f32.xlu0 %v1555_v14  ;;  %v1552_v35 = vsel %vm303_vm2, %v1550_v13, 0.0 }
 0xd05   :  { %1553 = vadd.xlane.f32.xlu1 %v1552_v35 }
 0xd91   :  { %v1557_v23 = vpop.xlane.xlu0 %1556 }
 0xd92   :  { %v1559_v24 = vmul.f32 0.03125, %v1557_v23  ;;  %v1554_v25 = vpop.xlane.xlu1 %1553 }
 0xd93   :  { %v1558_v16 = vmul.f32 0.03125, %v1554_v25 }
 0xd94   :  { %v1561_v26 = vadd.f32 1e-12, %v1559_v24 }
 0xd95   :  { %v1560_v29 = vadd.f32 1e-12, %v1558_v16 }
 0xd96   :  { %3870 = vrsqrt.f32 %v1561_v26 }
 0xd97   :  { %3872 = vrsqrt.f32 %v1560_v29 }
 0xda0   :  { %v3871_v17 = vpop.eup %3870 }
 0xda1   :  { %v3873_v30 = vpop.eup %3872  ;;  %v1565_v31 = vmul.f32 %v3871_v17, %v1549_v9 }
 0xda2   :  { %v1564_v34 = vmul.f32 %v3873_v30, %v1548_v7 }
 0xda3   :  { %v1573_v38 = vmul.f32 %v3134_v15, %v1565_v31 }
 0xda4   :  { %v1572_v39 = vmul.f32 %v3134_v15, %v1564_v34 }
 0xda5   :  { %v4707_v27 = vadd.f32 %v3135_v37, %v1573_v38 }
 0xda6   :  { %v4705_v40 = vadd.f32 %v3135_v37, %v1572_v39 }
 0xda8   :  { %3512 = vmatprep.mubr.msk.f32.mxu1 %vm303_vm2, %v4705_v40 }
 0xda9   :  { %3513 = vmatmul.mubr.msk.f32.vlgmr.msra.gmra.mrb[16].mxu1 %vm303_vm2, %v4707_v27 }
 0xdaa   :  { %3517 = vmatprep.mubr.msk.f32.mxu1 %vm4134_vm3, %v4133_v10 }
 0xe7c   :  { %v3514_v43 = vpop.f32.mrb[16].mxu1 }
 0xe7d   :  { %v4718_v44 = vadd.f32 %v3514_v43, %v3141_v42  ;;  %v1667_v45 = vpop.f32.mrb[17].mxu1 }
 0xe7e   :  { %v1668_v46 = vadd.f32 %v3141_v42, %v1667_v45 }
 0xe7f   :  { %1680 = vrot.lane.b32.xlu0 %v4718_v44, %s4135_s9 }
 0xe80   :  { %1678 = vrot.lane.b32.xlu1 %v1668_v46, %s4135_s9  ;;  %s5098_s9 = sld [smem:[#allocation33_spill]] }
 0xe84   :  { %1682 = vrot.lane.b32.xlu1 %v1668_v46, %s4136_s30 }
 0xe88   :  { %1758 = vrot.lane.b32.xlu1 %v4718_v44, %s4136_s30 }
 0xef1   :  { %v4726_v47 = vpop.permute.xlu0 %1680 }
 0xef2   :  { %1910 = vrot.lane.b32.xlu1 %v4726_v47, %s4136_s30  ;;  %v4730_v49 = vpop.permute.xlu1 %1678 }
 0xef3   :  { %1834 = vrot.lane.b32.xlu0 %v4730_v49, %s4136_s30  ;;  %s4141_s30 = smov [#allocation16]  }
 0xef6   :  { %v1683_v50 = vpop.permute.xlu1 %1682 }
 0xef7   :  { %3516 = vmatpush3.xpose.msk.msra.mxu1 %vm484_vm4, %v1683_v50 }
 0xef8   :  { %3520 = vmatprep.subr.mxu1 %v4133_v10 }
 0xefa   :  { %3518 = vmatmul.mubr.msk.f32.vlgmr.msra.gmra.mrb[18].mxu1 %vm484_vm4, %v1668_v46  ;;  %v1759_v51 = vpop.permute.xlu1 %1758 }
 0xefb   :  { %3521 = vmatpush3.xpose.msk.msra.mxu1 %vm484_vm4, %v1759_v51  ;;  %3522 = vmatprep.mubr.msk.f32.mxu1 %vm4134_vm3, %v4133_v10 }
 0xefc   :  { %3525 = vmatprep.subr.mxu1 %v4133_v10 }
 0xefe   :  { %3523 = vmatmul.mubr.msk.f32.vlgmr.msra.gmra.mrb[20].mxu1 %vm484_vm4, %v4718_v44 }
 0xeff   :  { %3527 = vmatprep.mubr.msk.f32.mxu1 %vm4134_vm3, %v4133_v10 }
 0xf64   :  { %v1911_v53 = vpop.permute.xlu1 %1910 }
 0xf65   :  { %v1835_v52 = vpop.permute.xlu0 %1834 }
 0xf66   :  { %3526 = vmatpush3.xpose.msk.msra.mxu1 %vm484_vm4, %v1835_v52  ;;  %v3156_v52 = vld [vmem:[%s5097_s1 + $0x20] sm:$0xff] }
 0xf67   :  { %3530 = vmatprep.subr.mxu1 %v4133_v10 }
 0xf69   :  { %3528 = vmatmul.mubr.msk.f32.vlgmr.msra.gmra.mrb[22].mxu1 %vm484_vm4, %v4730_v49 }
 0xf6a   :  { %3531 = vmatpush3.xpose.msk.msra.mxu1 %vm484_vm4, %v1911_v53  ;;  %3532 = vmatprep.mubr.msk.f32.mxu1 %vm4134_vm3, %v4133_v10  ;;  %v3157_v53 = vld [vmem:[%s5097_s1 + $0x28] sm:$0xff] }
 0xf6b   :  { %3535 = vmatprep.subr.mxu1 %v4133_v10 }
 0xf6d   :  { %3533 = vmatmul.mubr.msk.f32.vlgmr.msra.gmra.mrb[24].mxu1 %vm484_vm4, %v4726_v47 }
 0xf6e   :  { %3537 = vmatprep.mubr.msk.f32.mxu1 %vm4134_vm3, %v4133_v10 }
 0xfcd   :  { %v1754_v54 = vpop.f32.mrb[18].mxu1 }
 0xfce   :  { %v1986_v55 = vmul.f32 0.25, %v1754_v54  ;;  %v3519_v56 = vpop.f32.mrb[19].mxu1  ;;  %v3719_v54 = vpack.c.bf16 %v3157_v53, %v3156_v52  ;;  %v3174_v52 = vld [vmem:[%s5049_s15 + $0x88] sm:$0xff] }
 0xfd0   :  { %v1990_v57 = vadd.f32 %v1986_v55, %v4542_v36 }
 0xfd1   :  { %v1830_v58 = vpop.f32.mrb[20].mxu1 }
 0xfd2   :  { %v1987_v59 = vmul.f32 0.25, %v1830_v58  ;;  %v3524_v60 = vpop.f32.mrb[21].mxu1  ;;  %v1994_v61 = vsel %vm795_vm5, %v1990_v57, -inf  ;;  %v3159_v58 = vld [vmem:[%s5097_s1 + $0x38] sm:$0xff] }
 0xfd3   :  { %1995 = vmax.xlane.f32.xlu0 %v1994_v61 }
 0xfd4   :  { %v1991_v62 = vadd.f32 %v1987_v59, %v4546_v41 }
 0xfd6   :  { %v1997_v0 = vsel %vm795_vm5, %v1991_v62, -inf }
 0xfd7   :  { %1998 = vmax.xlane.f32.xlu1 %v1997_v0 }
 0xfe8   :  { %2038 = vrot.lane.b32.xlu1 %v1668_v46, %s4138_s2 }
0x103c   :  { %v1906_v2 = vpop.f32.mrb[22].mxu1 }
0x103d   :  { %v1988_v3 = vmul.f32 0.25, %v1906_v2  ;;  %v3529_v1 = vpop.f32.mrb[23].mxu1 }
0x103f   :  { %v1992_v63 = vadd.f32 %v1988_v3, %v4542_v36 }
0x1040   :  { %v1982_v4 = vpop.f32.mrb[24].mxu1 }
0x1041   :  { %v1989_v5 = vmul.f32 0.25, %v1982_v4  ;;  %v3534_v6 = vpop.f32.mrb[25].mxu1  ;;  %v2000_v8 = vsel %vm795_vm5, %v1992_v63, -inf }
0x1042   :  { %2001 = vmax.xlane.f32.xlu0 %v2000_v8  ;;  %v3161_v6 = vld [vmem:[%s5044_s10 + $0x1] ss:$0 sm:$0xff] }
0x1043   :  { %v1993_v11 = vadd.f32 %v1989_v5, %v4546_v41 }
0x1045   :  { %v2003_v9 = vsel %vm795_vm5, %v1993_v11, -inf }
0x1046   :  { %2004 = vmax.xlane.f32.xlu0 %v2003_v9 }
0x1060   :  { %v1996_v7 = vpop.xlane.xlu0 %1995 }
0x1061   :  { %v2006_v12 = vsub.f32 %v1990_v57, %v1996_v7  ;;  %v3158_v57 = vld [vmem:[%s5097_s1 + $0x30] sm:$0xff] }
0x1062   :  { %v3723_v59 = vpack.c.bf16 %v3159_v58, %v3158_v57  ;;  %v3177_v57 = vld [vmem:[%s5049_s15 + $0xa0] sm:$0xff]  ;;  %v3178_v58 = vld [vmem:[%s5049_s15 + $0xa8] sm:$0xff] }
0x1063   :  { %v2010_v13 = vmul.f32 1.442695, %v2006_v12 }
0x1064   :  { %v1999_v14 = vpop.xlane.xlu1 %1998 }
0x1065   :  { %3874 = vpow2.f32 %v2010_v13  ;;  %v2007_v35 = vsub.f32 %v1991_v62, %v1999_v14 }
0x1067   :  { %v2012_v32 = vmul.f32 1.442695, %v2007_v35 }
0x1068   :  { %v2039_v18 = vpop.permute.xlu1 %2038 }
0x1069   :  { %3876 = vpow2.f32 %v2012_v32  ;;  %3536 = vmatpush3.msra.mxu1 %v2039_v18 }
0x106a   :  { %3540 = vmatprep.subr.mxu1 %v4133_v10 }
0x106f   :  { %v3875_v36 = vpop.eup %3874 }
0x1070   :  { %v2018_v19 = vsel %vm795_vm5, %v3875_v36, 0.0 }
0x1071   :  { %2019 = vadd.xlane.f32.xlu1 %v2018_v19 }
0x1073   :  { %v3877_v41 = vpop.eup %3876 }
0x1074   :  { %v2021_v20 = vsel %vm795_vm5, %v3877_v41, 0.0 }
0x1075   :  { %2022 = vadd.xlane.f32.xlu0 %v2021_v20 }
0x10cf   :  { %v2002_v21 = vpop.xlane.xlu0 %2001 }
0x10d0   :  { %v2008_v22 = vsub.f32 %v1992_v63, %v2002_v21 }
0x10d2   :  { %v2014_v23 = vmul.f32 1.442695, %v2008_v22 }
0x10d3   :  { %v2005_v24 = vpop.xlane.xlu0 %2004 }
0x10d4   :  { %3878 = vpow2.f32 %v2014_v23  ;;  %v2009_v25 = vsub.f32 %v1993_v11, %v2005_v24  ;;  %v3167_v24 = vld [vmem:[%s5047_s13 + $0x28] sm:$0xff] }
0x10d6   :  { %v2016_v16 = vmul.f32 1.442695, %v2009_v25 }
0x10d8   :  { %3880 = vpow2.f32 %v2016_v16  ;;  %v3168_v16 = vld [vmem:[%s5047_s13 + $0x30] sm:$0xff] }
0x10de   :  { %v3879_v26 = vpop.eup %3878 }
0x10df   :  { %v2024_v29 = vsel %vm795_vm5, %v3879_v26, 0.0 }
0x10e0   :  { %2025 = vadd.xlane.f32.xlu1 %v2024_v29 }
0x10e2   :  { %v3881_v17 = vpop.eup %3880 }
0x10e3   :  { %v2027_v15 = vsel %vm795_vm5, %v3881_v17, 0.0 }
0x10e4   :  { %2028 = vadd.xlane.f32.xlu0 %v2027_v15 }
0x10f1   :  { %2190 = vrot.lane.b32.xlu1 %v4730_v49, %s4138_s2 }
0x10f5   :  { %2266 = vrot.lane.b32.xlu1 %v4726_v47, %s4138_s2 }
0x10fa   :  { %2114 = vrot.lane.b32.xlu0 %v4718_v44, %s4138_s2  ;;  %s3090_s2 = sshll.u32 %s4141_s30, 4  ;;  %s3091_s2 = int_to_ptr.vmem [resolvable:$true] %s3090_s2 }
0x10fb   :  { %p4089_p9 = scmp.lt.s32.totalorder %s3091_s2, %s3091_s2 }
0x10fe   :  { %v2020_v30 = vpop.xlane.xlu1 %2019 }
0x10ff   :  { %3882 = vrcp.f32 %v2020_v30 }
0x1102   :  { %v2023_v37 = vpop.xlane.xlu0 %2022 }
0x1103   :  { %3884 = vrcp.f32 %v2023_v37 }
0x1109   :  { %v3883_v31 = vpop.eup %3882 }
0x110a   :  { %v2031_v34 = vmul.f32 %v3883_v31, %v3875_v36 }
0x110c   :  { %3538 = vmatmul.mubr.msk.f32.vlgmr.msra.gmra.mrb[26].mxu1 %vm795_vm5, %v2031_v34 }
0x110d   :  { %3542 = vmatprep.mubr.msk.f32.mxu1 %vm4134_vm3, %v4133_v10  ;;  %v3885_v43 = vpop.eup %3884 }
0x110e   :  { %v2033_v45 = vmul.f32 %v3885_v43, %v3877_v41  ;;  %v3165_v43 = vld [vmem:[#allocation11 + $0x1] ss:$0 sm:$0xff] }
0x116d   :  { %v2026_v38 = vpop.xlane.xlu1 %2025 }
0x116e   :  { %3886 = vrcp.f32 %v2026_v38 }
0x1171   :  { %v2029_v39 = vpop.xlane.xlu0 %2028  ;;  %v2191_v42 = vpop.permute.xlu1 %2190 }
0x1172   :  { %3888 = vrcp.f32 %v2029_v39  ;;  %3546 = vmatpush3.msra.mxu0 %v2191_v42  ;;  %v3164_v39 = vld [vmem:[#allocation10 + $0x1] ss:$0 sm:$0xff] }
0x1173   :  { %3720 = vmatprep.subr.bf16.mxu0 %v3719_v54 }
0x1175   :  { %v2115_v44 = vpop.permute.xlu0 %2114  ;;  %v2267_v46 = vpop.permute.xlu1 %2266 }
0x1176   :  { %3541 = vmatpush3.msra.mxu1 %v2115_v44 }
0x1177   :  { %3543 = vmatmul.mubr.msk.f32.vlgmr.msra.gmra.mrb[28].mxu1 %vm795_vm5, %v2033_v45  ;;  %3550 = vmatprep.subr.mxu1 %v4133_v10 }
0x1178   :  { %v3887_v47 = vpop.eup %3886  ;;  %3551 = vmatpush3.msra.mxu1 %v2267_v46  ;;  %3552 = vmatprep.mubr.msk.f32.mxu1 %vm4134_vm3, %v4133_v10 }
0x1179   :  { %v2035_v49 = vmul.f32 %v3887_v47, %v3879_v26  ;;  %v3169_v26 = vld [vmem:[%s5047_s13 + $0x38] sm:$0xff] }
0x117a   :  { %v3731_v29 = vpack.c.bf16 %v3169_v26, %v3168_v16 }
0x117b   :  { %3548 = vmatmul.mubr.msk.f32.vlgmr.msra.gmra.mrb[10].mxu0 %vm795_vm5, %v2035_v49 }
0x117c   :  { %v3889_v50 = vpop.eup %3888  ;;  %3722 = vmatpush3.bf16.msra.mxu0 %v3719_v54  ;;  %v3175_v54 = vld [vmem:[%s5049_s15 + $0x90] sm:$0xff] }
0x117d   :  { %v2037_v51 = vmul.f32 %v3889_v50, %v3881_v17  ;;  %3724 = vmatprep.subr.bf16.mxu0 %v3723_v59 }
0x117f   :  { %3553 = vmatmul.mubr.msk.f32.vlgmr.msra.gmra.mrb[30].mxu1 %vm795_vm5, %v2037_v51  ;;  %v3173_v51 = vld [vmem:[%s5049_s15 + $0x80] sm:$0xff] }
0x1180   :  { %3726 = vmatpush3.bf16.msra.mxu0 %v3723_v59  ;;  %v3735_v53 = vpack.c.bf16 %v3174_v52, %v3173_v51  ;;  %v3743_v59 = vpack.c.bf16 %v3178_v58, %v3177_v57 }
0x1182   :  { %3736 = vmatprep.subr.bf16.mxu0 %v3735_v53 }
0x11df   :  { %v2110_v55 = vpop.f32.mrb[26].mxu1 }
0x11e0   :  { %v3539_v56 = vpop.f32.mrb[27].mxu1 }
0x124a   :  { %v2186_v60 = vpop.f32.mrb[28].mxu1 }
0x124b   :  { %v3544_v61 = vpop.f32.mrb[29].mxu1 }
0x124c   :  { %v3180_v61 = vld [vmem:[%s5049_s15 + $0xb8] sm:$0xff] }
0x124e   :  { %v2262_v62 = vpop.f32.mrb[10].mxu0 }
0x124f   :  { %2344 = vrot.lane.b32.xlu0 %v2262_v62, %s5091_s4  ;;  %v3549_v0 = vpop.f32.mrb[11].mxu0 }
0x1250   :  { %v3181_v0 = vld [vmem:[%s5049_s15 + $0xc0] sm:$0xff] }
0x1252   :  { %v2338_v2 = vpop.f32.mrb[30].mxu1 }
0x1253   :  { %2346 = vrot.lane.b32.xlu1 %v2338_v2, %s5091_s4  ;;  %v3554_v3 = vpop.f32.mrb[31].mxu1  ;;  %v3182_v2 = vld [vmem:[%s5049_s15 + $0xc8] sm:$0xff] }
0x1254   :  { %v3751_v3 = vpack.c.bf16 %v3182_v2, %v3181_v0 }
0x12c1   :  { %v2345_v1 = vpop.permute.xlu0 %2344 }
0x12c2   :  { %v2350_v63 = vsel %vm484_vm4, %v2110_v55, %v2345_v1  ;;  %v3176_v55 = vld [vmem:[%s5049_s15 + $0x98] sm:$0xff]  ;;  %v3183_v1 = vld [vmem:[%s5049_s15 + $0xd0] sm:$0xff] }
0x12c3   :  { %3563 = vmatprep.mubr.msk.f32.mxu0 %vm303_vm2, %v2350_v63  ;;  %v3739_v56 = vpack.c.bf16 %v3176_v55, %v3175_v54  ;;  %v3184_v63 = vld [vmem:[%s5049_s15 + $0xd8] sm:$0xff] }
0x12c5   :  { %v2347_v4 = vpop.permute.xlu1 %2346 }
0x12c6   :  { %v2351_v5 = vsel %vm484_vm4, %v2186_v60, %v2347_v4  ;;  %v3179_v60 = vld [vmem:[%s5049_s15 + $0xb0] sm:$0xff]  ;;  %v3755_v4 = vpack.c.bf16 %v3184_v63, %v3183_v1 }
0x12c7   :  { %3564 = vmatmul.mubr.msk.f32.vlgmr.msra.gmra.mrb[12].mxu0 %vm303_vm2, %v2351_v5  ;;  %v3747_v62 = vpack.c.bf16 %v3180_v61, %v3179_v60  ;;  %v3185_v5 = vld [vmem:[%s5049_s15 + $0xe0] sm:$0xff] }
0x12c8   :  { %3738 = vmatpush3.bf16.msra.mxu0 %v3735_v53 }
0x12c9   :  { %3740 = vmatprep.subr.bf16.mxu0 %v3739_v56 }
0x12cc   :  { %3742 = vmatpush3.bf16.msra.mxu0 %v3739_v56 }
0x12cd   :  { %3744 = vmatprep.subr.bf16.mxu0 %v3743_v59 }
0x12d0   :  { %3746 = vmatpush3.bf16.msra.mxu0 %v3743_v59 }
0x12d1   :  { %3748 = vmatprep.subr.bf16.mxu0 %v3747_v62 }
0x12d4   :  { %3750 = vmatpush3.bf16.msra.mxu0 %v3747_v62 }
0x12d5   :  { %3752 = vmatprep.subr.bf16.mxu0 %v3751_v3 }
0x12d8   :  { %3754 = vmatpush3.bf16.msra.mxu0 %v3751_v3 }
0x12d9   :  { %3756 = vmatprep.subr.bf16.mxu0 %v3755_v4 }
0x12dc   :  { %3758 = vmatpush3.bf16.msra.mxu0 %v3755_v4 }
0x139a   :  { %v3565_v8 = vpop.f32.mrb[12].mxu0 }
0x139b   :  { %v2443_v11 = vadd.f32 %v3565_v8, %v3161_v6  ;;  %v2437_v9 = vpop.f32.mrb[13].mxu0 }
0x139c   :  { %v2438_v7 = vadd.f32 %v3161_v6, %v2437_v9  ;;  %v3186_v6 = vld [vmem:[%s5049_s15 + $0xe8] sm:$0xff]  ;;  %v3188_v9 = vld [vmem:[%s5049_s15 + $0xf8] sm:$0xff] }
0x139d   :  { %v2447_v12 = vadd.f32 %v2443_v11, %v4707_v27  ;;  %v3759_v8 = vpack.c.bf16 %v3186_v6, %v3185_v5  ;;  %v3187_v11 = vld [vmem:[%s5049_s15 + $0xf0] sm:$0xff] }
0x139e   :  { %v2446_v13 = vadd.f32 %v2438_v7, %v4705_v40  ;;  %v3166_v40 = vld [vmem:[%s5047_s13 + $0x20] sm:$0xff]  ;;  %v3763_v7 = vpack.c.bf16 %v3188_v9, %v3187_v11 }
0x139f   :  { %v2455_v14 = vsel %vm303_vm2, %v2447_v12, 0.0  ;;  %v3727_v25 = vpack.c.bf16 %v3167_v24, %v3166_v40  ;;  %3760 = vmatprep.subr.bf16.mxu0 %v3759_v8  ;;  %v3190_v11 = vld [vmem:[%s5050_s16 + $0x1] ss:$0 sm:$0xff] }
0x13a0   :  { %2456 = vadd.xlane.f32.xlu1 %v2455_v14  ;;  %v2452_v35 = vsel %vm303_vm2, %v2446_v13, 0.0  ;;  %3762 = vmatpush3.bf16.msra.mxu0 %v3759_v8 }
0x13a1   :  { %2453 = vadd.xlane.f32.xlu0 %v2452_v35  ;;  %3728 = vmatprep.subr.bf16.mxu1 %v3727_v25 }
0x13a2   :  { %3730 = vmatpush3.bf16.msra.mxu1 %v3727_v25  ;;  %3764 = vmatprep.subr.bf16.mxu0 %v3763_v7 }
0x13a3   :  { %3732 = vmatprep.subr.bf16.mxu1 %v3731_v29 }
0x13a4   :  { %3766 = vmatpush3.bf16.msra.mxu0 %v3763_v7 }
0x13a6   :  { %3734 = vmatpush3.bf16.msra.mxu1 %v3731_v29 }
0x142d   :  { %v2457_v32 = vpop.xlane.xlu1 %2456 }
0x142e   :  { %v2459_v18 = vmul.f32 0.03125, %v2457_v32  ;;  %v2454_v36 = vpop.xlane.xlu0 %2453 }
0x142f   :  { %v2458_v19 = vmul.f32 0.03125, %v2454_v36 }
0x1430   :  { %v2461_v41 = vsub.f32 %v2447_v12, %v2459_v18  ;;  %v3170_v12 = vld [vmem:[#allocation13 + $0x1] ss:$0 sm:$0xff] }
0x1431   :  { %v2460_v20 = vsub.f32 %v2446_v13, %v2458_v19 }
0x1432   :  { %v2463_v23 = vmul.f32 %v2461_v41, %v2461_v41 }
0x1433   :  { %v2462_v21 = vmul.f32 %v2460_v20, %v2460_v20 }
0x1434   :  { %v2467_v27 = vsel %vm303_vm2, %v2463_v23, 0.0 }
0x1435   :  { %v2464_v22 = vsel %vm303_vm2, %v2462_v21, 0.0 }
0x1436   :  { %2465 = vadd.xlane.f32.xlu0 %v2464_v22 }
0x143a   :  { %2468 = vadd.xlane.f32.xlu0 %v2467_v27 }
0x14c3   :  { %v2466_v17 = vpop.xlane.xlu0 %2465 }
0x14c4   :  { %v2470_v15 = vmul.f32 0.03125, %v2466_v17 }
0x14c6   :  { %v2472_v30 = vadd.f32 1e-12, %v2470_v15 }
0x14c7   :  { %v2469_v31 = vpop.xlane.xlu0 %2468 }
0x14c8   :  { %3890 = vrsqrt.f32 %v2472_v30  ;;  %v2471_v34 = vmul.f32 0.03125, %v2469_v31 }
0x14ca   :  { %v2473_v37 = vadd.f32 1e-12, %v2471_v34 }
0x14cc   :  { %3892 = vrsqrt.f32 %v2473_v37 }
0x14d2   :  { %v3891_v38 = vpop.eup %3890 }
0x14d3   :  { %v2476_v42 = vmul.f32 %v3891_v38, %v2460_v20 }
0x14d5   :  { %v2484_v45 = vmul.f32 %v3164_v39, %v2476_v42 }
0x14d6   :  { %v3893_v44 = vpop.eup %3892 }
0x14d7   :  { %v2477_v46 = vmul.f32 %v3893_v44, %v2461_v41  ;;  %v4825_v47 = vadd.f32 %v3165_v43, %v2484_v45 }
0x14d9   :  { %v2485_v49 = vmul.f32 %v3164_v39, %v2477_v46  ;;  %3574 = vmatprep.mubr.msk.f32.mxu1 %vm303_vm2, %v4825_v47 }
0x14db   :  { %v4829_v50 = vadd.f32 %v3165_v43, %v2485_v49 }
0x14dd   :  { %3575 = vmatmul.mubr.msk.f32.vlgmr.msra.gmra.mrb[32].mxu1 %vm303_vm2, %v4829_v50 }
0x14de   :  { %3620 = vmatprep.mubr.msk.f32.mxu1 %vm4134_vm3, %v4133_v10 }
0x15b0   :  { %v3576_v13 = vpop.f32.mrb[32].mxu1 }
0x15b1   :  { %v2585_v14 = vadd.f32 %v3576_v13, %v3170_v12  ;;  %v2579_v35 = vpop.f32.mrb[33].mxu1 }
0x15b2   :  { %v2580_v32 = vadd.f32 %v3170_v12, %v2579_v35 }
0x15b3   :  { %v2591_v18 = vmul.f32 0.70710677, %v2585_v14  ;;  %v2589_v5 = vmul.f32 0.5, %v2585_v14 }
0x15b4   :  { %v2590_v36 = vmul.f32 0.70710677, %v2580_v32  ;;  %v2588_v63 = vmul.f32 0.5, %v2580_v32 }
0x15b5   :  { %v2597_v19 = vand.u32 2147483647, %v2591_v18  ;;  %vm2593_vm8 = vcmp.ge.f32.partialorder %v2591_v18, 0.0 }
0x15b6   :  { %v2596_v41 = vand.u32 2147483647, %v2590_v36  ;;  %vm2592_vm9 = vcmp.ge.f32.partialorder %v2590_v36, 0.0  ;;  %v2595_v61 = vsel %vm2593_vm8, 1.0, %v4139_v48 }
0x15b7   :  { %v2599_v20 = vmul.f32 0.3275911, %v2597_v19  ;;  %v2625_v27 = vsub.f32 0.0, %v2597_v19  ;;  %v2594_v2 = vsel %vm2592_vm9, 1.0, %v4139_v48 }
0x15b8   :  { %v2598_v21 = vmul.f32 0.3275911, %v2596_v41  ;;  %v2624_v40 = vsub.f32 0.0, %v2596_v41 }
0x15b9   :  { %v2601_v22 = vadd.f32 1.0, %v2599_v20  ;;  %v2627_v25 = vmul.f32 %v2625_v27, %v2597_v19 }
0x15ba   :  { %v2600_v23 = vadd.f32 1.0, %v2598_v21  ;;  %v2626_v29 = vmul.f32 %v2624_v40, %v2596_v41  ;;  %v2796_v40 = vld [vmem:[%s5053_s19 + $0x8] sm:$0xff] }
0x15bb   :  { %3894 = vrcp.f32 %v2601_v22  ;;  %v2630_v30 = vmul.f32 1.442695, %v2627_v25  ;;  %v4140_v25 = vmov 0.0|0.0  }
0x15bc   :  { %3896 = vrcp.f32 %v2600_v23  ;;  %v2628_v37 = vmul.f32 1.442695, %v2626_v29  ;;  %3767 = vmatprep.subr.bf16.mxu1 %v4140_v25 }
0x15bd   :  { %3898 = vpow2.f32 %v2630_v30 }
0x15be   :  { %3900 = vpow2.f32 %v2628_v37 }
0x15c5   :  { %v3895_v24 = vpop.eup %3894 }
0x15c6   :  { %v3897_v16 = vpop.eup %3896  ;;  %v2607_v26 = vmul.f32 1.0614054, %v3895_v24 }
0x15c7   :  { %v2606_v17 = vmul.f32 1.0614054, %v3897_v16  ;;  %v3899_v55 = vpop.eup %3898 }
0x15c8   :  { %v2609_v15 = vadd.f32 -1.4531521, %v2607_v26  ;;  %v3901_v57 = vpop.eup %3900  ;;  %v2798_v26 = vld [vmem:[%s5053_s19 + $0x18] sm:$0xff] }
0x15c9   :  { %v2608_v31 = vadd.f32 -1.4531521, %v2606_v17 }
0x15ca   :  { %v2611_v34 = vmul.f32 %v3895_v24, %v2609_v15 }
0x15cb   :  { %v2610_v38 = vmul.f32 %v3897_v16, %v2608_v31 }
0x15cc   :  { %v2613_v39 = vadd.f32 1.4214138, %v2611_v34 }
0x15cd   :  { %v2612_v42 = vadd.f32 1.4214138, %v2610_v38 }
0x15ce   :  { %v2615_v43 = vmul.f32 %v3895_v24, %v2613_v39  ;;  %v3193_v39 = vld [vmem:[%s5051_s17 + $0x1] ss:$0 sm:$0xff] }
0x15cf   :  { %v2614_v45 = vmul.f32 %v3897_v16, %v2612_v42 }
0x15d0   :  { %v2617_v44 = vadd.f32 -0.28449672, %v2615_v43 }
0x15d1   :  { %v2616_v46 = vadd.f32 -0.28449672, %v2614_v45 }
0x15d2   :  { %v2619_v49 = vmul.f32 %v3895_v24, %v2617_v44  ;;  %v3194_v44 = vld [vmem:[%s5052_s18 + $0x1] ss:$0 sm:$0xff] }
0x15d3   :  { %v2618_v51 = vmul.f32 %v3897_v16, %v2616_v46 }
0x15d4   :  { %v2621_v52 = vadd.f32 0.2548296, %v2619_v49 }
0x15d5   :  { %v2620_v53 = vadd.f32 0.2548296, %v2618_v51 }
0x15d6   :  { %v2623_v54 = vmul.f32 %v3895_v24, %v2621_v52 }
0x15d7   :  { %v2622_v56 = vmul.f32 %v3897_v16, %v2620_v53  ;;  %v2797_v16 = vld [vmem:[%s5053_s19 + $0x10] sm:$0xff] }
0x15d8   :  { %v2633_v58 = vmul.f32 %v3899_v55, %v2623_v54  ;;  %v3771_v29 = vpack.c.bf16 %v2798_v26, %v2797_v16  ;;  %v2881_v55 = vld [vmem:[#allocation14 + $0x8] sm:$0xff] }
0x15d9   :  { %v2632_v59 = vmul.f32 %v3901_v57, %v2622_v56  ;;  %v2883_v56 = vld [vmem:[#allocation14 + $0x18] sm:$0xff]  ;;  %v2880_v57 = vld [vmem:[#allocation14] sm:$0xff]  ;;  %v2999_v16 = vld [vmem:[%s5057_s23 + $0xc8] sm:$0xff] }
0x15da   :  { %v2635_v60 = vsub.f32 1.0, %v2633_v58  ;;  %v3773_v58 = vpack.c.bf16 %v2883_v56, %v2881_v55  ;;  %v2988_v55 = vld [vmem:[%s5057_s23 + $0x70] sm:$0xff]  ;;  %v2989_v56 = vld [vmem:[%s5057_s23 + $0x78] sm:$0xff] }
0x15db   :  { %v2634_v62 = vsub.f32 1.0, %v2632_v59  ;;  %v2882_v59 = vld [vmem:[#allocation14 + $0x10] sm:$0xff] }
0x15dc   :  { %v2637_v0 = vmul.f32 %v2635_v60, %v2595_v61  ;;  %v2885_v60 = vld [vmem:[#allocation14 + $0x28] sm:$0xff]  ;;  %v2887_v61 = vld [vmem:[#allocation14 + $0x38] sm:$0xff] }
0x15dd   :  { %v2636_v3 = vmul.f32 %v2634_v62, %v2594_v2  ;;  %v3775_v62 = vpack.c.bf16 %v2882_v59, %v2880_v57  ;;  %v2884_v2 = vld [vmem:[#allocation14 + $0x20] sm:$0xff]  ;;  %v3811_v57 = vpack.c.bf16 %v2989_v56, %v2988_v55 }
0x15de   :  { %v2639_v1 = vadd.f32 1.0, %v2637_v0  ;;  %v3777_v0 = vpack.c.bf16 %v2887_v61, %v2885_v60  ;;  %v2888_v59 = vld [vmem:[%s5056_s22] sm:$0x3]  ;;  %s4084_s22 = scalar_lea.vmem %s3091_s2, 32 }
0x15df   :  { %v2638_v4 = vadd.f32 1.0, %v2636_v3  ;;  %v2886_v3 = vld [vmem:[#allocation14 + $0x30] sm:$0xff]  ;;  %v2893_v61 = vrot.slane %v2888_v59, %v4539_v33  ;;  %p4085_p8 = scmp.ne.s32.totalorder %s3091_s2, %s4084_s22  ;;  %p4090_p10 = scmp.lt.s32.totalorder %s4084_s22, %s4084_s22 }
0x15e0   :  { %v2641_v8 = vmul.f32 %v2639_v1, %v2589_v5  ;;  %v3779_v1 = vpack.c.bf16 %v2886_v3, %v2884_v2  ;;  %v3195_v5 = vld [vmem:[%s5054_s20] ss:$0 sm:$0xff] }
0x15e1   :  { %v2640_v6 = vmul.f32 %v2638_v4, %v2588_v63  ;;  %v2991_v63 = vld [vmem:[%s5057_s23 + $0x88] sm:$0xff]  ;;  %p4091_p11 = por %p4090_p10, %p4089_p9 }
0x15e3   :  { %3609 = vmatprep.mubr.f32.mxu0 %v2640_v6  ;;  %p4092_p12 = pnand %p4091_p11, %p4085_p8 }
0x15e4   :  { %3610 = vmatmul.mubr.f32.vlgmr.msra.gmra.mrb[14].mxu0 %v2641_v8 }
0x16b7   :  { %v3611_v9 = vpop.f32.mrb[14].mxu0 }
0x16b8   :  { %v2739_v7 = vadd.f32 %v3611_v9, %v3190_v11  ;;  %v2733_v12 = vpop.f32.mrb[15].mxu0  ;;  %v2974_v9 = vld [vmem:[%s5057_s23] sm:$0xff] }
0x16b9   :  { %v2734_v13 = vadd.f32 %v3190_v11, %v2733_v12  ;;  %v2992_v12 = vld [vmem:[%s5057_s23 + $0x90] sm:$0xff] }
0x16ba   :  { %v2743_v35 = vadd.f32 %v2739_v7, %v4829_v50  ;;  %v2975_v7 = vld [vmem:[%s5057_s23 + $0x8] sm:$0xff] }
0x16bb   :  { %v2742_v48 = vadd.f32 %v2734_v13, %v4825_v47  ;;  %v2795_v47 = vld [vmem:[%s5053_s19] sm:$0xff]  ;;  %v2993_v13 = vld [vmem:[%s5057_s23 + $0x98] sm:$0xff] }
0x16bc   :  { %v2751_v32 = vsel %vm303_vm2, %v2743_v35, 0.0  ;;  %v3768_v24 = vpack.c.bf16 %v2796_v40, %v2795_v47  ;;  %v2980_v40 = vld [vmem:[%s5057_s23 + $0x30] sm:$0xff] }
0x16bd   :  { %2752 = vadd.xlane.f32.xlu1 %v2751_v32  ;;  %v2748_v14 = vsel %vm303_vm2, %v2742_v48, 0.0  ;;  %v2976_v32 = vld [vmem:[%s5057_s23 + $0x10] sm:$0xff] }
0x16be   :  { %2749 = vadd.xlane.f32.xlu0 %v2748_v14  ;;  %3769 = vmatpush3.bf16.msra.mxu1 %v3768_v24  ;;  %v2977_v14 = vld [vmem:[%s5057_s23 + $0x18] sm:$0xff] }
0x16bf   :  { %3770 = vmatprep.subr.bf16.mxu1 %v4140_v25  ;;  %v2981_v24 = vld [vmem:[%s5057_s23 + $0x38] sm:$0xff]  ;;  %v2998_v25 = vld [vmem:[%s5057_s23 + $0xc0] sm:$0xff] }
0x16c0   :  { %v3795_v26 = vpack.c.bf16 %v2981_v24, %v2980_v40 }
0x16c2   :  { %3772 = vmatpush3.bf16.msra.mxu1 %v3771_v29  ;;  %v3797_v29 = vpack.c.bf16 %v2999_v16, %v2998_v25 }
0x16c3   :  { %3774 = vmatprep.subr.bf16.mxu1 %v3773_v58  ;;  %v2896_v58 = vsub.s32 1, %v4535_v28 }
0x16c5   :  { %v2897_v60 = vrot.slane %v2888_v59, %v2896_v58 }
0x174a   :  { %v2753_v18 = vpop.xlane.xlu1 %2752 }
0x174b   :  { %v2755_v36 = vmul.f32 0.03125, %v2753_v18  ;;  %v2750_v19 = vpop.xlane.xlu0 %2749 }
0x174c   :  { %v2754_v41 = vmul.f32 0.03125, %v2750_v19  ;;  %v2995_v19 = vld [vmem:[%s5057_s23 + $0xa8] sm:$0xff] }
0x174d   :  { %v2757_v20 = vsub.f32 %v2743_v35, %v2755_v36  ;;  %v3783_v35 = vpack.c.bf16 %v2975_v7, %v2974_v9  ;;  %v2994_v36 = vld [vmem:[%s5057_s23 + $0xa0] sm:$0xff] }
0x174e   :  { %v2756_v21 = vsub.f32 %v2742_v48, %v2754_v41  ;;  %v3785_v48 = vpack.c.bf16 %v2993_v13, %v2992_v12  ;;  %v3787_v41 = vpack.c.bf16 %v2977_v14, %v2976_v32 }
0x174f   :  { %v2759_v22 = vmul.f32 %v2757_v20, %v2757_v20 }
0x1750   :  { %v2758_v23 = vmul.f32 %v2756_v21, %v2756_v21 }
0x1751   :  { %v2763_v27 = vsel %vm303_vm2, %v2759_v22, 0.0  ;;  %v2979_v22 = vld [vmem:[%s5057_s23 + $0x28] sm:$0xff] }
0x1752   :  { %2764 = vadd.xlane.f32.xlu1 %v2763_v27  ;;  %v2760_v50 = vsel %vm303_vm2, %v2758_v23, 0.0  ;;  %v2996_v23 = vld [vmem:[%s5057_s23 + $0xb0] sm:$0xff]  ;;  %v2997_v27 = vld [vmem:[%s5057_s23 + $0xb8] sm:$0xff] }
0x1753   :  { %2761 = vadd.xlane.f32.xlu0 %v2760_v50  ;;  %v3793_v47 = vpack.c.bf16 %v2997_v27, %v2996_v23 }
0x17df   :  { %v2765_v17 = vpop.xlane.xlu1 %2764 }
0x17e0   :  { %v2767_v15 = vmul.f32 0.03125, %v2765_v17  ;;  %v2762_v30 = vpop.xlane.xlu0 %2761  ;;  %v2982_v17 = vld [vmem:[%s5057_s23 + $0x40] sm:$0xff] }
0x17e1   :  { %v2766_v31 = vmul.f32 0.03125, %v2762_v30  ;;  %v3000_v30 = vld [vmem:[%s5057_s23 + $0xd0] sm:$0xff] }
0x17e2   :  { %v2769_v34 = vadd.f32 1e-12, %v2767_v15  ;;  %v2983_v15 = vld [vmem:[%s5057_s23 + $0x48] sm:$0xff] }
0x17e3   :  { %v2768_v37 = vadd.f32 1e-12, %v2766_v31  ;;  %v3001_v31 = vld [vmem:[%s5057_s23 + $0xd8] sm:$0xff] }
0x17e4   :  { %3902 = vrsqrt.f32 %v2769_v34  ;;  %v3799_v34 = vpack.c.bf16 %v2983_v15, %v2982_v17 }
0x17e5   :  { %3904 = vrsqrt.f32 %v2768_v37  ;;  %v3801_v37 = vpack.c.bf16 %v3001_v31, %v3000_v30 }
0x17ee   :  { %v3903_v38 = vpop.eup %3902 }
0x17ef   :  { %v3905_v42 = vpop.eup %3904  ;;  %v2773_v43 = vmul.f32 %v3903_v38, %v2757_v20  ;;  %v3789_v20 = vpack.c.bf16 %v2995_v19, %v2994_v36  ;;  %v2984_v38 = vld [vmem:[%s5057_s23 + $0x50] sm:$0xff] }
0x17f0   :  { %v2772_v45 = vmul.f32 %v3905_v42, %v2756_v21  ;;  %v2978_v21 = vld [vmem:[%s5057_s23 + $0x20] sm:$0xff] }
0x17f1   :  { %v2781_v46 = vmul.f32 %v3193_v39, %v2773_v43  ;;  %v3791_v50 = vpack.c.bf16 %v2979_v22, %v2978_v21  ;;  %v3002_v42 = vld [vmem:[%s5057_s23 + $0xe0] sm:$0xff]  ;;  %v3003_v43 = vld [vmem:[%s5057_s23 + $0xe8] sm:$0xff] }
0x17f2   :  { %v2780_v49 = vmul.f32 %v3193_v39, %v2772_v45  ;;  %v2985_v39 = vld [vmem:[%s5057_s23 + $0x58] sm:$0xff] }
0x17f3   :  { %v2789_v51 = vadd.f32 %v3194_v44, %v2781_v46  ;;  %v3803_v45 = vpack.c.bf16 %v2985_v39, %v2984_v38  ;;  %v2986_v46 = vld [vmem:[%s5057_s23 + $0x60] sm:$0xff] }
0x17f4   :  { %v2788_v52 = vadd.f32 %v3194_v44, %v2780_v49  ;;  %v3805_v44 = vpack.c.bf16 %v3003_v43, %v3002_v42  ;;  %v2987_v49 = vld [vmem:[%s5057_s23 + $0x68] sm:$0xff] }
0x17f5   :  { %v2791_v53 = vrot.slane %v2789_v51, 7  ;;  %v3807_v51 = vpack.c.bf16 %v2987_v49, %v2986_v46 }
0x17f7   :  { %v2794_v54 = vsel %vm2793_vm10, %v2788_v52, %v2791_v53  ;;  %v3004_v52 = vld [vmem:[%s5057_s23 + $0xf0] sm:$0xff]  ;;  %v3005_v53 = vld [vmem:[%s5057_s23 + $0xf8] sm:$0xff] }
0x17f8   :  { %3621 = vmatmul.mubr.msk.f32.vlgmr.msra.gmra.mrb[34].mxu1 %vm303_vm2, %v2794_v54  ;;  %v3809_v54 = vpack.c.bf16 %v3005_v53, %v3004_v52 }
0x17f9   :  { %2967 = vmatprep.mubr.f32.mxu1 %v4133_v10  ;;  %3776 = vmatpush1.bf16.msra.mxu1 %v3775_v62  ;;  %v2990_v10 = vld [vmem:[%s5057_s23 + $0x80] sm:$0xff] }
0x17fa   :  { %3778 = vmatprep.subr.bf16.mxu1 %v3777_v0  ;;  %v3781_v4 = vpack.c.bf16 %v2991_v63, %v2990_v10  ;;  %v3198_v10 = vld [vmem:[%s5098_s9] ss:$0 sm:$0xff] }
0x17fd   :  { %3780 = vmatpush1.bf16.msra.mxu1 %v3779_v1 }
0x17fe   :  { %3782 = vmatprep.subr.bf16.mxu1 %v3781_v4 }
0x18cb   :  { %v2875_v6 = vpop.f32.mrb[34].mxu1 }
0x18cc   :  { %v2876_v8 = vadd.f32 %v3195_v5, %v2875_v6  ;;  %v3622_v11 = vpop.f32.mrb[35].mxu1 }
0x18ce   :  { %3906 = vtanh.f32 %v2876_v8 }
0x18d8   :  { %v3907_v18 = vpop.eup %3906 }
0x18d9   :  { %3197 = vmatmul.mubr.msk.f32.vlgmr.msra.gmra.mrb[36].mxu1 %vm303_vm2, %v3907_v18 }
0x18da   :  { %3784 = vmatpush3.bf16.msra.mxu1 %v3783_v35 }
0x18db   :  { %3786 = vmatprep.subr.bf16.mxu1 %v3785_v48 }
0x18de   :  { %3788 = vmatpush3.bf16.msra.mxu1 %v3787_v41 }
0x18df   :  { %3790 = vmatprep.subr.bf16.mxu1 %v3789_v20 }
0x18e2   :  { %3792 = vmatpush3.bf16.msra.mxu1 %v3791_v50 }
0x18e3   :  { %3794 = vmatprep.subr.bf16.mxu1 %v3793_v47 }
0x18e6   :  { %3796 = vmatpush3.bf16.msra.mxu1 %v3795_v26 }
0x18e7   :  { %3798 = vmatprep.subr.bf16.mxu1 %v3797_v29 }
0x18ea   :  { %3800 = vmatpush3.bf16.msra.mxu1 %v3799_v34 }
0x18eb   :  { %3802 = vmatprep.subr.bf16.mxu1 %v3801_v37 }
0x18ee   :  { %3804 = vmatpush3.bf16.msra.mxu1 %v3803_v45 }
0x18ef   :  { %3806 = vmatprep.subr.bf16.mxu1 %v3805_v44 }
0x18f2   :  { %3808 = vmatpush3.bf16.msra.mxu1 %v3807_v51 }
0x18f3   :  { %3810 = vmatprep.subr.bf16.mxu1 %v3809_v54 }
0x18f6   :  { %3812 = vmatpush3.bf16.msra.mxu1 %v3811_v57 }
0x19ac   :  { %v2969_v62 = vpop.f32.mrb[36].mxu1 }
0x19ad   :  { %v2971_v0 = vpop.f32.mrb[37].mxu1  ;;  %v2970_v3 = vadd.f32 %v2969_v62, %v2893_v61 }
0x19ae   :  { %v2972_v2 = vadd.f32 %v2971_v0, %v2897_v60 }
0x19b0   :  { %3077 = vmatprep.mubr.f32.mxu1 %v2972_v2 }
0x19b1   :  { %3078 = vmatmul.mubr.f32.vlgmr.msra.gmra.mrb[38].mxu1 %v2970_v3 }
0x1a84   :  { %v3358_v1 = vpop.f32.mrb[38].mxu1 }
0x1a85   :  { %v3359_v63 = vpop.f32.mrb[39].mxu1 }
0x1a86   :  { %v3360_v28 = vadd.f32 %v3359_v63, %v3358_v1 }
0x1a88   :  { %v3080_v4 = vadd.f32 %v3360_v28, %v3198_v10 }
0x1a8a   :  { %3083 = vst [vmem:[#allocation16] sm:$0x3] %v3080_v4 }
0x1a8b   :  { %4095 = shalt.err (!%p4092_p12)
}
0x1a8c   :  { %s5099_s29 = sld [smem:[#allocation34_spill]] }
0x1a92   :  { %s4096_s16 = scalar_lea.hbm %s5099_s29, 32 }
0x1a93   :  { %p4097_p13 = scmp.ne.s32.totalorder %s5099_s29, %s4096_s16  ;;  %p4100_p0 = scmp.lt.u32.totalorder %s4096_s16, %s5099_s29 }
0x1a95   :  { %p4102_p1 = pnand %p4100_p0, %p4097_p13 }
0x1a97   :  { %4105 = shalt.err (!%p4102_p1)
}
0x1a98   :  { %3093 = dma.vmem_to_hbm [thread:$0]  %s3091_s2, 32, %s5099_s29, [#allocation4]  }
0x1a99   :  { %4116 = dma.done.wait [#allocation4], 32  }
0x1a9a   :  { %4117 = vsyncadd [#allocation4], 4294967264 }
0x1a9b   :  { %3097 = vsyncpa [#allocation3], 1 }
0x1a9c   :  { %3098 = vsyncpa [#allocation6], 1 }
0x1a9d   :  { %3099 = vsyncpa [#allocation9], 1 }
0x1a9e   :  { %3100 = vsyncpa [#allocation12], 1 }
0x1a9f   :  { %3101 = vsyncpa [#allocation15], 1 }
0x1aa0   :  { %3102 = vsyncpa [#allocation4], 1 }

</bundles_post_ra>
